<compile_context>
chip_gen: v7x
topology: tpu7x:2x2x1
jax: 0.10.0
libtpu: 0.0.40
codegen_flags: <defaults>
</compile_context>

<pallas_src>
import jax
import jax.numpy as jnp
import numpy as np
from jax.experimental import pallas as pl
from jax.experimental.pallas import tpu as pltpu

IMAGE_SIZE = 784
H_DIM = 400
Z_DIM = 20

LANE = 128
SUBLANE = 8


def _round_up(x, m):
    return (x + m - 1) // m * m


IMG_PAD = _round_up(IMAGE_SIZE, LANE)   # 896 : lane-dense image axis
Z_PAD = LANE                            # 128 : z_dim padded to one lane tile


def vae_kernel(x_ref, eps_ref,
               w1_ref, b1_ref, w23_ref, b23_ref,
               w4_ref, b4_ref, w5_ref, b5_ref,
               xr_ref, mulv_ref):
    # encode: h = relu(x @ W1 + b1)   (bf16 MXU inputs, f32 accumulate)
    h = jnp.dot(x_ref[...], w1_ref[...],
                preferred_element_type=jnp.float32) + b1_ref[...]
    h = jnp.maximum(h, 0.0)

    # fused fc2 || fc3 -> one lane-dense [tile_b, 2*Z_PAD] result.
    # mu lives in lanes [0, 128), log_var in lanes [128, 256); only the first
    # Z_DIM lanes of each half carry real data, the rest is zero-padded.
    mulv = jnp.dot(h.astype(jnp.bfloat16), w23_ref[...],
                   preferred_element_type=jnp.float32) + b23_ref[...]
    mu = mulv[:, :Z_PAD]
    log_var = mulv[:, Z_PAD:]

    # reparameterize: z = mu + eps * exp(log_var / 2)  (eps from host RNG)
    std = jnp.exp(log_var * 0.5)
    z = mu + eps_ref[...] * std

    # decode: padded rows of W4 are zero, so the padded z lanes contribute nothing.
    h2 = jnp.dot(z.astype(jnp.bfloat16), w4_ref[...],
                 preferred_element_type=jnp.float32) + b4_ref[...]
    h2 = jnp.maximum(h2, 0.0)
    logits = jnp.dot(h2.astype(jnp.bfloat16), w5_ref[...],
                     preferred_element_type=jnp.float32) + b5_ref[...]

    # sigmoid = 1 / (1 + exp(-x)); exp + reciprocal both use the EUP slot.
    xr_ref[...] = pl.reciprocal(1.0 + jnp.exp(-logits), approx=True)
    mulv_ref[...] = mulv


def vae_forward(x, eps, params, *, tile_b=256):
    """x: [B, 784] f32, eps: [B, 20] f32 (the randn_like draw).

    params: packed/padded bf16 weights + f32 biases from pack_params().
    Returns (x_reconst [B,784], mu [B,20], log_var [B,20]), all f32.
    """
    B = x.shape[0]
    assert x.shape[1] == IMAGE_SIZE and eps.shape[1] == Z_DIM

    # batch tile: multiple of 8 sublanes, no bigger than the (padded) batch.
    tile_b = _round_up(min(tile_b, _round_up(B, SUBLANE)), SUBLANE)
    b_pad = _round_up(B, tile_b)

    # Input tile is bf16 in HBM (kernel fed the MXU bf16 anyway) -> half DMA.
    x_pad = (jnp.zeros((b_pad, IMG_PAD), jnp.bfloat16)
             .at[:B, :IMAGE_SIZE].set(x.astype(jnp.bfloat16)))
    eps_pad = jnp.zeros((b_pad, Z_PAD), jnp.float32).at[:B, :Z_DIM].set(eps)

    grid = (b_pad // tile_b,)

    def batch_spec(feat):
        return pl.BlockSpec((tile_b, feat), lambda i: (i, 0))

    def resident_spec(arr):
        # constant block index -> weight stays resident in VMEM across grid steps
        return pl.BlockSpec(arr.shape, lambda i: (0, 0))

    out_shapes = (
        jax.ShapeDtypeStruct((b_pad, IMG_PAD), jnp.float32),    # x_reconst (padded)
        jax.ShapeDtypeStruct((b_pad, 2 * Z_PAD), jnp.float32),  # mu || log_var (padded)
    )

    flops = 2 * b_pad * (IMG_PAD * H_DIM + H_DIM * 2 * Z_PAD
                         + Z_PAD * H_DIM + H_DIM * IMG_PAD)
    bytes_accessed = (x_pad.size * 2 + eps_pad.size * 4
                      + sum(int(np.prod(p.shape)) * p.dtype.itemsize for p in params)
                      + b_pad * (IMG_PAD + 2 * Z_PAD) * 4)
    cost = pl.CostEstimate(flops=flops,
                           transcendentals=b_pad * (Z_PAD + IMG_PAD),
                           bytes_accessed=bytes_accessed)

    xr_pad, mulv = pl.pallas_call(
        vae_kernel,
        out_shape=out_shapes,
        grid=grid,
        in_specs=[batch_spec(IMG_PAD), batch_spec(Z_PAD)]
                 + [resident_spec(p) for p in params],
        out_specs=(batch_spec(IMG_PAD), batch_spec(2 * Z_PAD)),
        compiler_params=pltpu.CompilerParams(
            dimension_semantics=("parallel",)),
        cost_estimate=cost,
    )(x_pad, eps_pad, *params)

    x_reconst = xr_pad[:B, :IMAGE_SIZE]
    mu = mulv[:B, :Z_DIM]
    log_var = mulv[:B, Z_PAD:Z_PAD + Z_DIM]
    return x_reconst, mu, log_var


def init_raw_params(key, image_size=IMAGE_SIZE, h_dim=H_DIM, z_dim=Z_DIM):
    """Synthetic nn.Linear-style params as [(W[in,out], b[out]), ...] in f32."""
    dims = [
        (image_size, h_dim),  # fc1
        (h_dim, z_dim),       # fc2
        (h_dim, z_dim),       # fc3
        (z_dim, h_dim),       # fc4
        (h_dim, image_size),  # fc5
    ]
    raw = []
    for fan_in, fan_out in dims:
        key, kw, kb = jax.random.split(key, 3)
        scale = 1.0 / np.sqrt(fan_in)
        w = jax.random.uniform(kw, (fan_in, fan_out), jnp.float32, -scale, scale)
        b = jax.random.uniform(kb, (fan_out,), jnp.float32, -scale, scale)
        raw.append((w, b))
    return raw


def pack_params(raw):
    """Pad + fuse + cast the raw params into the kernel layout.

    Weights -> bf16, zero-padded so padding never changes the math.
    fc2/fc3 are fused into one [H_DIM, 2*Z_PAD] weight (mu half, log_var half).
    Biases stay f32 (added after the f32-accumulated matmul).
    """
    (w1, b1), (w2, b2), (w3, b3), (w4, b4), (w5, b5) = raw

    w1_p = (jnp.zeros((IMG_PAD, H_DIM), jnp.bfloat16)
            .at[:IMAGE_SIZE, :].set(w1.astype(jnp.bfloat16)))
    b1_p = b1.reshape(1, H_DIM).astype(jnp.float32)

    w23_p = (jnp.zeros((H_DIM, 2 * Z_PAD), jnp.bfloat16)
             .at[:, :Z_DIM].set(w2.astype(jnp.bfloat16))
             .at[:, Z_PAD:Z_PAD + Z_DIM].set(w3.astype(jnp.bfloat16)))
    b23_p = (jnp.zeros((1, 2 * Z_PAD), jnp.float32)
             .at[0, :Z_DIM].set(b2)
             .at[0, Z_PAD:Z_PAD + Z_DIM].set(b3))

    w4_p = (jnp.zeros((Z_PAD, H_DIM), jnp.bfloat16)
            .at[:Z_DIM, :].set(w4.astype(jnp.bfloat16)))
    b4_p = b4.reshape(1, H_DIM).astype(jnp.float32)

    w5_p = (jnp.zeros((H_DIM, IMG_PAD), jnp.bfloat16)
            .at[:, :IMAGE_SIZE].set(w5.astype(jnp.bfloat16)))
    b5_p = jnp.zeros((1, IMG_PAD), jnp.float32).at[0, :IMAGE_SIZE].set(b5)

    return (w1_p, b1_p, w23_p, b23_p, w4_p, b4_p, w5_p, b5_p)


def vae_reference(x, eps, raw):
    """Pure-JAX reference with the same bf16 weight/activation cast (f32 accumulate)."""
    (w1, b1), (w2, b2), (w3, b3), (w4, b4), (w5, b5) = raw

    def lin(a, w, b):
        return jnp.dot(a.astype(jnp.bfloat16), w.astype(jnp.bfloat16),
                       preferred_element_type=jnp.float32) + b

    h = jax.nn.relu(lin(x, w1, b1))
    mu = lin(h, w2, b2)
    log_var = lin(h, w3, b3)
    z = mu + eps * jnp.exp(log_var * 0.5)
    h2 = jax.nn.relu(lin(z, w4, b4))
    x_reconst = jax.nn.sigmoid(lin(h2, w5, b5))
    return x_reconst, mu, log_var


if __name__ == "__main__":
    key = jax.random.PRNGKey(0)
    k_param, k_x, k_eps = jax.random.split(key, 3)

    batch = 16
    raw = init_raw_params(k_param)
    params = pack_params(raw)

    x = jax.random.uniform(k_x, (batch, IMAGE_SIZE), jnp.float32)   # "image" input
    eps = jax.random.normal(k_eps, (batch, Z_DIM), jnp.float32)     # randn_like(std)

    # tile_b=8 so the small test batch still exercises a multi-step grid (grid=(2,)).
    x_reconst, mu, log_var = vae_forward(x, eps, params, tile_b=8)
    jax.block_until_ready((x_reconst, mu, log_var))

    # sanity checks: shapes + agreement with a pure-JAX reference
    assert x_reconst.shape == (batch, IMAGE_SIZE)
    assert mu.shape == (batch, Z_DIM) and log_var.shape == (batch, Z_DIM)

    xr_ref, mu_ref, lv_ref = vae_reference(x, eps, raw)
    np.testing.assert_allclose(np.asarray(mu), np.asarray(mu_ref), rtol=2e-2, atol=2e-2)
    np.testing.assert_allclose(np.asarray(log_var), np.asarray(lv_ref), rtol=2e-2, atol=2e-2)
    np.testing.assert_allclose(np.asarray(x_reconst), np.asarray(xr_ref), rtol=2e-2, atol=2e-2)

    print("KERNEL_OK")
</pallas_src>

<mosaic_0001>
module attributes {stable_mosaic.version = 11 : i64} {
  func.func @vae_kernel(%arg0: i32, %arg1: memref<8x896xbf16, #tpu.memory_space<vmem>>, %arg2: memref<8x128xf32, #tpu.memory_space<vmem>>, %arg3: memref<896x400xbf16, #tpu.memory_space<vmem>>, %arg4: memref<1x400xf32, #tpu.memory_space<vmem>>, %arg5: memref<400x256xbf16, #tpu.memory_space<vmem>>, %arg6: memref<1x256xf32, #tpu.memory_space<vmem>>, %arg7: memref<128x400xbf16, #tpu.memory_space<vmem>>, %arg8: memref<1x400xf32, #tpu.memory_space<vmem>>, %arg9: memref<400x896xbf16, #tpu.memory_space<vmem>>, %arg10: memref<1x896xf32, #tpu.memory_space<vmem>>, %arg11: memref<8x896xf32, #tpu.memory_space<vmem>>, %arg12: memref<8x256xf32, #tpu.memory_space<vmem>>) attributes {dimension_semantics = [#tpu.dimension_semantics<parallel>], iteration_bounds = array<i64: 2>, scalar_prefetch = 0 : i64, scratch_operands = 0 : i64, tpu.core_type = #tpu.core_type<tc>, window_params = [{transform_indices = @transform_0, window_bounds = array<i64: 8, 896>}, {transform_indices = @transform_1, window_bounds = array<i64: 8, 128>}, {pipeline_mode = #tpu.pipeline_mode<synchronous>, transform_indices = @transform_2, window_bounds = array<i64: 896, 400>}, {pipeline_mode = #tpu.pipeline_mode<synchronous>, transform_indices = @transform_3, window_bounds = array<i64: 1, 400>}, {pipeline_mode = #tpu.pipeline_mode<synchronous>, transform_indices = @transform_4, window_bounds = array<i64: 400, 256>}, {pipeline_mode = #tpu.pipeline_mode<synchronous>, transform_indices = @transform_5, window_bounds = array<i64: 1, 256>}, {pipeline_mode = #tpu.pipeline_mode<synchronous>, transform_indices = @transform_6, window_bounds = array<i64: 128, 400>}, {pipeline_mode = #tpu.pipeline_mode<synchronous>, transform_indices = @transform_7, window_bounds = array<i64: 1, 400>}, {pipeline_mode = #tpu.pipeline_mode<synchronous>, transform_indices = @transform_8, window_bounds = array<i64: 400, 896>}, {pipeline_mode = #tpu.pipeline_mode<synchronous>, transform_indices = @transform_9, window_bounds = array<i64: 1, 896>}, {transform_indices = @transform_10, window_bounds = array<i64: 8, 896>}, {transform_indices = @transform_11, window_bounds = array<i64: 8, 256>}]} {
    %c0 = arith.constant 0 : index
    %c0_0 = arith.constant 0 : index
    %0 = vector.load %arg1[%c0, %c0_0] : memref<8x896xbf16, #tpu.memory_space<vmem>>, vector<8x896xbf16>
    %c0_1 = arith.constant 0 : index
    %c0_2 = arith.constant 0 : index
    %1 = vector.load %arg3[%c0_1, %c0_2] : memref<896x400xbf16, #tpu.memory_space<vmem>>, vector<896x400xbf16>
    %cst = arith.constant dense<0.000000e+00> : vector<8x400xf32>
    %2 = tpu.matmul %0, %1, %cst {dimension_numbers = #tpu.dot_dimension_numbers<[1], [0], [0], [1], [0, 0, 1, 1], [], []>} : vector<8x896xbf16>, vector<896x400xbf16>, vector<8x400xf32> -> vector<8x400xf32>
    %c0_3 = arith.constant 0 : index
    %c0_4 = arith.constant 0 : index
    %3 = vector.load %arg4[%c0_3, %c0_4] : memref<1x400xf32, #tpu.memory_space<vmem>>, vector<1x400xf32>
    %4 = vector.broadcast %3 : vector<1x400xf32> to vector<8x400xf32>
    %5 = arith.addf %2, %4 : vector<8x400xf32>
    %cst_5 = arith.constant 0.000000e+00 : f32
    %6 = vector.broadcast %cst_5 : f32 to vector<8x400xf32>
    %7 = arith.maximumf %5, %6 : vector<8x400xf32>
    %8 = arith.truncf %7 : vector<8x400xf32> to vector<8x400xbf16>
    %c0_6 = arith.constant 0 : index
    %c0_7 = arith.constant 0 : index
    %9 = vector.load %arg5[%c0_6, %c0_7] : memref<400x256xbf16, #tpu.memory_space<vmem>>, vector<400x256xbf16>
    %cst_8 = arith.constant dense<0.000000e+00> : vector<8x256xf32>
    %10 = tpu.matmul %8, %9, %cst_8 {dimension_numbers = #tpu.dot_dimension_numbers<[1], [0], [0], [1], [0, 0, 1, 1], [], []>} : vector<8x400xbf16>, vector<400x256xbf16>, vector<8x256xf32> -> vector<8x256xf32>
    %c0_9 = arith.constant 0 : index
    %c0_10 = arith.constant 0 : index
    %11 = vector.load %arg6[%c0_9, %c0_10] : memref<1x256xf32, #tpu.memory_space<vmem>>, vector<1x256xf32>
    %12 = vector.broadcast %11 : vector<1x256xf32> to vector<8x256xf32>
    %13 = arith.addf %10, %12 : vector<8x256xf32>
    %14 = vector.extract_strided_slice %13 {offsets = [0, 0], sizes = [8, 128], strides = [1, 1]} : vector<8x256xf32> to vector<8x128xf32>
    %15 = vector.extract_strided_slice %13 {offsets = [0, 128], sizes = [8, 128], strides = [1, 1]} : vector<8x256xf32> to vector<8x128xf32>
    %cst_11 = arith.constant 5.000000e-01 : f32
    %16 = vector.broadcast %cst_11 : f32 to vector<8x128xf32>
    %17 = arith.mulf %15, %16 : vector<8x128xf32>
    %18 = math.exp %17 : vector<8x128xf32>
    %c0_12 = arith.constant 0 : index
    %c0_13 = arith.constant 0 : index
    %19 = vector.load %arg2[%c0_12, %c0_13] : memref<8x128xf32, #tpu.memory_space<vmem>>, vector<8x128xf32>
    %20 = arith.mulf %19, %18 : vector<8x128xf32>
    %21 = arith.addf %14, %20 : vector<8x128xf32>
    %22 = arith.truncf %21 : vector<8x128xf32> to vector<8x128xbf16>
    %c0_14 = arith.constant 0 : index
    %c0_15 = arith.constant 0 : index
    %23 = vector.load %arg7[%c0_14, %c0_15] : memref<128x400xbf16, #tpu.memory_space<vmem>>, vector<128x400xbf16>
    %cst_16 = arith.constant dense<0.000000e+00> : vector<8x400xf32>
    %24 = tpu.matmul %22, %23, %cst_16 {dimension_numbers = #tpu.dot_dimension_numbers<[1], [0], [0], [1], [0, 0, 1, 1], [], []>} : vector<8x128xbf16>, vector<128x400xbf16>, vector<8x400xf32> -> vector<8x400xf32>
    %c0_17 = arith.constant 0 : index
    %c0_18 = arith.constant 0 : index
    %25 = vector.load %arg8[%c0_17, %c0_18] : memref<1x400xf32, #tpu.memory_space<vmem>>, vector<1x400xf32>
    %26 = vector.broadcast %25 : vector<1x400xf32> to vector<8x400xf32>
    %27 = arith.addf %24, %26 : vector<8x400xf32>
    %cst_19 = arith.constant 0.000000e+00 : f32
    %28 = vector.broadcast %cst_19 : f32 to vector<8x400xf32>
    %29 = arith.maximumf %27, %28 : vector<8x400xf32>
    %30 = arith.truncf %29 : vector<8x400xf32> to vector<8x400xbf16>
    %c0_20 = arith.constant 0 : index
    %c0_21 = arith.constant 0 : index
    %31 = vector.load %arg9[%c0_20, %c0_21] : memref<400x896xbf16, #tpu.memory_space<vmem>>, vector<400x896xbf16>
    %cst_22 = arith.constant dense<0.000000e+00> : vector<8x896xf32>
    %32 = tpu.matmul %30, %31, %cst_22 {dimension_numbers = #tpu.dot_dimension_numbers<[1], [0], [0], [1], [0, 0, 1, 1], [], []>} : vector<8x400xbf16>, vector<400x896xbf16>, vector<8x896xf32> -> vector<8x896xf32>
    %c0_23 = arith.constant 0 : index
    %c0_24 = arith.constant 0 : index
    %33 = vector.load %arg10[%c0_23, %c0_24] : memref<1x896xf32, #tpu.memory_space<vmem>>, vector<1x896xf32>
    %34 = vector.broadcast %33 : vector<1x896xf32> to vector<8x896xf32>
    %35 = arith.addf %32, %34 : vector<8x896xf32>
    %cst_25 = arith.constant 0.000000e+00 : f32
    %36 = vector.broadcast %cst_25 : f32 to vector<8x896xf32>
    %37 = arith.subf %36, %35 : vector<8x896xf32>
    %38 = math.exp %37 : vector<8x896xf32>
    %cst_26 = arith.constant 1.000000e+00 : f32
    %39 = vector.broadcast %cst_26 : f32 to vector<8x896xf32>
    %40 = arith.addf %39, %38 : vector<8x896xf32>
    %41 = tpu.reciprocal %40 {approx = true} : vector<8x896xf32> -> vector<8x896xf32>
    %c0_27 = arith.constant 0 : index
    %c0_28 = arith.constant 0 : index
    %42 = vector.load %arg11[%c0_27, %c0_28] : memref<8x896xf32, #tpu.memory_space<vmem>>, vector<8x896xf32>
    tpu.vector_store %arg11[%c0_27, %c0_28], %41 {strides = array<i32>} : memref<8x896xf32, #tpu.memory_space<vmem>>, vector<8x896xf32>,
    %c0_29 = arith.constant 0 : index
    %c0_30 = arith.constant 0 : index
    %43 = vector.load %arg12[%c0_29, %c0_30] : memref<8x256xf32, #tpu.memory_space<vmem>>, vector<8x256xf32>
    tpu.vector_store %arg12[%c0_29, %c0_30], %13 {strides = array<i32>} : memref<8x256xf32, #tpu.memory_space<vmem>>, vector<8x256xf32>,
    return
  }
  func.func @transform_0(%arg0: i32) -> (i32, i32) {
    %c0_i32 = arith.constant 0 : i32
    %c0_i32_0 = arith.constant 0 : i32
    return %arg0, %c0_i32 : i32, i32
  }
  func.func @transform_1(%arg0: i32) -> (i32, i32) {
    %c0_i32 = arith.constant 0 : i32
    %c0_i32_0 = arith.constant 0 : i32
    return %arg0, %c0_i32 : i32, i32
  }
  func.func @transform_2(%arg0: i32) -> (i32, i32) {
    %c0_i32 = arith.constant 0 : i32
    %c0_i32_0 = arith.constant 0 : i32
    %c0_i32_1 = arith.constant 0 : i32
    return %c0_i32, %c0_i32_0 : i32, i32
  }
  func.func @transform_3(%arg0: i32) -> (i32, i32) {
    %c0_i32 = arith.constant 0 : i32
    %c0_i32_0 = arith.constant 0 : i32
    %c0_i32_1 = arith.constant 0 : i32
    return %c0_i32, %c0_i32_0 : i32, i32
  }
  func.func @transform_4(%arg0: i32) -> (i32, i32) {
    %c0_i32 = arith.constant 0 : i32
    %c0_i32_0 = arith.constant 0 : i32
    %c0_i32_1 = arith.constant 0 : i32
    return %c0_i32, %c0_i32_0 : i32, i32
  }
  func.func @transform_5(%arg0: i32) -> (i32, i32) {
    %c0_i32 = arith.constant 0 : i32
    %c0_i32_0 = arith.constant 0 : i32
    %c0_i32_1 = arith.constant 0 : i32
    return %c0_i32, %c0_i32_0 : i32, i32
  }
  func.func @transform_6(%arg0: i32) -> (i32, i32) {
    %c0_i32 = arith.constant 0 : i32
    %c0_i32_0 = arith.constant 0 : i32
    %c0_i32_1 = arith.constant 0 : i32
    return %c0_i32, %c0_i32_0 : i32, i32
  }
  func.func @transform_7(%arg0: i32) -> (i32, i32) {
    %c0_i32 = arith.constant 0 : i32
    %c0_i32_0 = arith.constant 0 : i32
    %c0_i32_1 = arith.constant 0 : i32
    return %c0_i32, %c0_i32_0 : i32, i32
  }
  func.func @transform_8(%arg0: i32) -> (i32, i32) {
    %c0_i32 = arith.constant 0 : i32
    %c0_i32_0 = arith.constant 0 : i32
    %c0_i32_1 = arith.constant 0 : i32
    return %c0_i32, %c0_i32_0 : i32, i32
  }
  func.func @transform_9(%arg0: i32) -> (i32, i32) {
    %c0_i32 = arith.constant 0 : i32
    %c0_i32_0 = arith.constant 0 : i32
    %c0_i32_1 = arith.constant 0 : i32
    return %c0_i32, %c0_i32_0 : i32, i32
  }
  func.func @transform_10(%arg0: i32) -> (i32, i32) {
    %c0_i32 = arith.constant 0 : i32
    %c0_i32_0 = arith.constant 0 : i32
    return %arg0, %c0_i32 : i32, i32
  }
  func.func @transform_11(%arg0: i32) -> (i32, i32) {
    %c0_i32 = arith.constant 0 : i32
    %c0_i32_0 = arith.constant 0 : i32
    return %arg0, %c0_i32 : i32, i32
  }
}

</mosaic_0001>

<bundles_post_ra>
// kernel: tpu_custom_call.1
= control target key start
LH: loop header
LB: loop body
LE: loop exit
PB: predicated region body
PF: predicated region fallthrough
CT: control target
= control target key end

     0   :  { %s7753_s0 = inlined_call_operand.vmem [shape: bf16[16,896], index: 0, kind: input, shape index: {}]   ;;  %s7754_s1 = inlined_call_operand.vmem [shape: f32[16,128], index: 1, kind: input, shape index: {}]   ;;  %s7755_s2 = inlined_call_operand.vmem [shape: bf16[896,400], index: 2, kind: input, shape index: {}]   ;;  %s7756_s3 = inlined_call_operand.vmem [shape: f32[1,400], index: 3, kind: input, shape index: {}]   ;;  %s7757_s4 = inlined_call_operand.vmem [shape: bf16[400,256], index: 4, kind: input, shape index: {}]   ;;  %s7758_s5 = inlined_call_operand.vmem [shape: f32[1,256], index: 5, kind: input, shape index: {}]   ;;  %s7759_s6 = inlined_call_operand.vmem [shape: bf16[128,400], index: 6, kind: input, shape index: {}]   ;;  %s7760_s7 = inlined_call_operand.vmem [shape: f32[1,400], index: 7, kind: input, shape index: {}]   ;;  %s7761_s8 = inlined_call_operand.vmem [shape: bf16[400,896], index: 8, kind: input, shape index: {}]   ;;  %s7762_s9 = inlined_call_operand.vmem [shape: f32[1,896], index: 9, kind: input, shape index: {}]   ;;  %s7763_s10 = inlined_call_operand.hbm [shape: f32[16,896], index: 10, kind: output, shape index: {0}]   ;;  %s7764_s11 = inlined_call_operand.hbm [shape: f32[16,256], index: 11, kind: output, shape index: {1}]  }
   0x1   :  { %7768 = sst [smem:[#allocation11_spill]] %s7753_s0 }
   0x2   :  { %17 = vsyncpa [#allocation3], 0 }
   0x3   :  { %19 = vsyncpa [#allocation3 + $0x1], 0 }
   0x4   :  { %20 = vsyncpa [#allocation5], 0 }
   0x5   :  { %22 = vsyncpa [#allocation5 + $0x1], 0  ;;  %s6035_s17 = smov 0   ;;  %s6037_s18 = smov 0  }
   0x6   :  { %s6039_s19 = smov 0   ;;  %s6041_s20 = smov 0  }
   0x7 LB: > { %7769 = sst [smem:[#allocation8_spill]] %s5966_s19  ;;  %s6056_s21 = sadd.s32 4294967295, %s5970_s20   ;;  %s5970_s20 = sphi %s6041_s20, %s7775_s20   ;;  %s5966_s19 = sphi %s6039_s19, %s7777_s19   ;;  %s5962_s18 = sphi %s6037_s18, %s7779_s18   ;;  %s5958_s17 = sphi %s6035_s17, %s7778_s17  }
   0x8   : > { %s4501_s22 = sadd.s32 4294967294, %s5970_s20   ;;  %s6060_s23 = sadd.s32 1, %s5970_s20  }
   0x9   : > { %7770 = sst [smem:[#allocation9_spill]] %s6060_s23  ;;  %s255_s24 = sadd.s32 1, %s5966_s19 }
   0xa   : > { %s252_s25 = ssub.s32 %s5970_s20, %s6060_s23  ;;  %p265_p0 = scmp.ne.s32.totalorder %s5966_s19, %s5962_s18 }
   0xb   : > { %p253_p1 = scmp.eq.s32.totalorder %s252_s25, 0  ;;  %p266_p2 = scmp.eq.s32.totalorder %s6056_s21, 1 }
   0xc   : > { %p271_p3 = scmp.ne.s32.totalorder %s5962_s18, %s5958_s17  ;;  %p272_p4 = scmp.eq.s32.totalorder %s4501_s22, 1 }
   0xd   : > { %s6071_s26 = scalar_select %p253_p1, %s5966_s19, %s255_s24  }
   0xe   : > { %p6073_p5 = por %p266_p2, %p265_p0  ;;  %p6077_p6 = por %p272_p4, %p271_p3 }
   0xf   : > { %7771 = sst [smem:[#allocation10_spill]] %s6071_s26  ;;  %p4504_p7 = scmp.ge.s32.totalorder %s5970_s20, 1 }
  0x10   : > { %p355_p8 = scmp.lt.s32.totalorder %s5970_s20, 3 }
  0x12   : > { %p356_p9 = pnand %p4504_p7, %p355_p8 }
  0x13   : > { %v5130_v0 = vld [vmem:[%s7755_s2 + $0x4] ss:$16 sps:$4 sm:$0xff] (!%p356_p9)   ;;  %v5132_v1 = vld [vmem:[%s7755_s2 + $0xc] ss:$16 sps:$4 sm:$0xff] (!%p356_p9)   ;;  %v5134_v2 = vld [vmem:[%s7755_s2] ss:$16 sps:$4 sm:$0xff] (!%p356_p9)  }
  0x14   : > { %359 = sbr.rel (%p356_p9) target bundleno = 1349 (0x545), region = 60  ;;  %1809 = vmatprep.subr.bf16.mxu0 (!%p356_p9), %v5130_v0  ;;  %v5135_v3 = vld [vmem:[%s7755_s2 + $0x8] ss:$16 sps:$4 sm:$0xff] (!%p356_p9)   ;;  %1973 = vmatprep.subr.bf16.mxu1 (!%p356_p9), %v5132_v1  ;;  %v5136_v4 = vld [vmem:[%s7755_s2 + $0x24] ss:$16 sps:$4 sm:$0xff] (!%p356_p9)   ;;  %p404_p10 = scmp.lt.s32.totalorder (!%p356_p9), %s6056_s21, 1 }
  0x15   : > { %1810 = vmatpush1.bf16.msra.mxu0 (!%p356_p9), %v5134_v2  ;;  %1974 = vmatpush1.bf16.msra.mxu1 (!%p356_p9), %v5135_v3  ;;  %v5138_v5 = vld [vmem:[%s7755_s2 + $0x2c] ss:$16 sps:$4 sm:$0xff] (!%p356_p9)   ;;  %v5140_v6 = vld [vmem:[%s7755_s2 + $0x20] ss:$16 sps:$4 sm:$0xff] (!%p356_p9)   ;;  %v5141_v7 = vld [vmem:[%s7755_s2 + $0x28] ss:$16 sps:$4 sm:$0xff] (!%p356_p9)  }
  0x16   : > { %1811 = vmatprep.subr.bf16.mxu0 (!%p356_p9), %v5136_v4  ;;  %1975 = vmatprep.subr.bf16.mxu1 (!%p356_p9), %v5138_v5  ;;  %v5142_v8 = vld [vmem:[%s7755_s2 + $0x44] ss:$16 sps:$4 sm:$0xff] (!%p356_p9)   ;;  %v5144_v9 = vld [vmem:[%s7755_s2 + $0x4c] ss:$16 sps:$4 sm:$0xff] (!%p356_p9)   ;;  %v5146_v10 = vld [vmem:[%s7755_s2 + $0x40] ss:$16 sps:$4 sm:$0xff] (!%p356_p9)  }
  0x17   : > { %v5147_v11 = vld [vmem:[%s7755_s2 + $0x48] ss:$16 sps:$4 sm:$0xff] (!%p356_p9)   ;;  %v5148_v12 = vld [vmem:[%s7755_s2 + $0x64] ss:$16 sps:$4 sm:$0xff] (!%p356_p9)   ;;  %v5150_v13 = vld [vmem:[%s7755_s2 + $0x6c] ss:$16 sps:$4 sm:$0xff] (!%p356_p9)  }
  0x18   : > { %v5152_v14 = vld [vmem:[%s7755_s2 + $0x60] ss:$16 sps:$4 sm:$0xff] (!%p356_p9)   ;;  %v5153_v15 = vld [vmem:[%s7755_s2 + $0x68] ss:$16 sps:$4 sm:$0xff] (!%p356_p9)   ;;  %v5154_v16 = vld [vmem:[%s7755_s2 + $0x84] ss:$16 sps:$4 sm:$0xff] (!%p356_p9)  }
  0x19   : > { %1812 = vmatpush1.bf16.msra.mxu0 (!%p356_p9), %v5140_v6  ;;  %1976 = vmatpush1.bf16.msra.mxu1 (!%p356_p9), %v5141_v7  ;;  %v5156_v17 = vld [vmem:[%s7755_s2 + $0x8c] ss:$16 sps:$4 sm:$0xff] (!%p356_p9)   ;;  %v5158_v18 = vld [vmem:[%s7755_s2 + $0x80] ss:$16 sps:$4 sm:$0xff] (!%p356_p9)   ;;  %v5159_v19 = vld [vmem:[%s7755_s2 + $0x88] ss:$16 sps:$4 sm:$0xff] (!%p356_p9)  }
  0x1a   : > { %1813 = vmatprep.subr.bf16.mxu0 (!%p356_p9), %v5142_v8  ;;  %1977 = vmatprep.subr.bf16.mxu1 (!%p356_p9), %v5144_v9  ;;  %v5160_v20 = vld [vmem:[%s7755_s2 + $0xa4] ss:$16 sps:$4 sm:$0xff] (!%p356_p9)   ;;  %v5162_v21 = vld [vmem:[%s7755_s2 + $0xac] ss:$16 sps:$4 sm:$0xff] (!%p356_p9)   ;;  %v5164_v22 = vld [vmem:[%s7755_s2 + $0xa0] ss:$16 sps:$4 sm:$0xff] (!%p356_p9)  }
  0x1b   : > { %v5165_v23 = vld [vmem:[%s7755_s2 + $0xa8] ss:$16 sps:$4 sm:$0xff]   ;;  %v5166_v24 = vld [vmem:[%s7755_s2 + $0xc4] ss:$16 sps:$4 sm:$0xff]   ;;  %v5168_v25 = vld [vmem:[%s7755_s2 + $0xcc] ss:$16 sps:$4 sm:$0xff]  }
  0x1c   : > { %v5170_v26 = vld [vmem:[%s7755_s2 + $0xc0] ss:$16 sps:$4 sm:$0xff]   ;;  %v5171_v27 = vld [vmem:[%s7755_s2 + $0xc8] ss:$16 sps:$4 sm:$0xff]   ;;  %v5172_v28 = vld [vmem:[%s7755_s2 + $0xe4] ss:$16 sps:$4 sm:$0xff]  }
  0x1d   : > { %1814 = vmatpush1.bf16.msra.mxu0 %v5146_v10  ;;  %1978 = vmatpush1.bf16.msra.mxu1 %v5147_v11  ;;  %v5174_v29 = vld [vmem:[%s7755_s2 + $0xec] ss:$16 sps:$4 sm:$0xff]   ;;  %v5176_v30 = vld [vmem:[%s7755_s2 + $0xe0] ss:$16 sps:$4 sm:$0xff]   ;;  %v5177_v31 = vld [vmem:[%s7755_s2 + $0xe8] ss:$16 sps:$4 sm:$0xff]  }
  0x1e   : > { %1815 = vmatprep.subr.bf16.mxu0 %v5148_v12  ;;  %1979 = vmatprep.subr.bf16.mxu1 %v5150_v13  ;;  %v5178_v32 = vld [vmem:[%s7755_s2 + $0x104] ss:$16 sps:$4 sm:$0xff]   ;;  %v5180_v33 = vld [vmem:[%s7755_s2 + $0x10c] ss:$16 sps:$4 sm:$0xff]   ;;  %v5182_v34 = vld [vmem:[%s7755_s2 + $0x100] ss:$16 sps:$4 sm:$0xff]  }
  0x1f   : > { %v5183_v35 = vld [vmem:[%s7755_s2 + $0x108] ss:$16 sps:$4 sm:$0xff]   ;;  %s6193_s12 = scalar_select %p404_p10, %s6056_s21, 1  ;;  %v5184_v36 = vld [vmem:[%s7755_s2 + $0x124] ss:$16 sps:$4 sm:$0xff]   ;;  %vm2457_vm0 = vcmask 130048  }
  0x20   : > { %v5186_v37 = vld [vmem:[%s7755_s2 + $0x12c] ss:$16 sps:$4 sm:$0xff]   ;;  %v5188_v38 = vld [vmem:[%s7755_s2 + $0x120] ss:$16 sps:$4 sm:$0xff]   ;;  %v5189_v39 = vld [vmem:[%s7755_s2 + $0x128] ss:$16 sps:$4 sm:$0xff]  }
  0x21   : > { %1816 = vmatpush1.bf16.msra.mxu0 %v5152_v14  ;;  %1980 = vmatpush1.bf16.msra.mxu1 %v5153_v15  ;;  %s5083_s25 = smul.u32 28, %s6193_s12  ;;  %v5190_v40 = vld [vmem:[%s7755_s2 + $0x144] ss:$16 sps:$4 sm:$0xff]   ;;  %v5192_v41 = vld [vmem:[%s7755_s2 + $0x14c] ss:$16 sps:$4 sm:$0xff]   ;;  %s7774_s0 = sld [smem:[#allocation11_spill]] }
  0x22   : > { %1817 = vmatprep.subr.bf16.mxu0 %v5154_v16  ;;  %1981 = vmatprep.subr.bf16.mxu1 %v5156_v17  ;;  %v5194_v42 = vld [vmem:[%s7755_s2 + $0x140] ss:$16 sps:$4 sm:$0xff]   ;;  %v5195_v43 = vld [vmem:[%s7755_s2 + $0x148] ss:$16 sps:$4 sm:$0xff]   ;;  %v5196_v44 = vld [vmem:[%s7755_s2 + $0x164] ss:$16 sps:$4 sm:$0xff]  }
  0x23   : > { %v5198_v45 = vld [vmem:[%s7755_s2 + $0x16c] ss:$16 sps:$4 sm:$0xff]   ;;  %v5200_v47 = vld [vmem:[%s7755_s2 + $0x160] ss:$16 sps:$4 sm:$0xff]   ;;  %v5201_v49 = vld [vmem:[%s7755_s2 + $0x168] ss:$16 sps:$4 sm:$0xff]  }
  0x24   : > { %v5202_v50 = vld [vmem:[%s7755_s2 + $0x184] ss:$16 sps:$4 sm:$0xff]   ;;  %v5204_v51 = vld [vmem:[%s7755_s2 + $0x18c] ss:$16 sps:$4 sm:$0xff]   ;;  %v5206_v52 = vld [vmem:[%s7755_s2 + $0x180] ss:$16 sps:$4 sm:$0xff]  }
  0x25   : > { %1818 = vmatpush1.bf16.msra.mxu0 %v5158_v18  ;;  %1982 = vmatpush1.bf16.msra.mxu1 %v5159_v19  ;;  %v5207_v53 = vld [vmem:[%s7755_s2 + $0x188] ss:$16 sps:$4 sm:$0xff]   ;;  %v5208_v54 = vld [vmem:[%s7755_s2 + $0x1a4] ss:$16 sps:$4 sm:$0xff]   ;;  %v5210_v55 = vld [vmem:[%s7755_s2 + $0x1ac] ss:$16 sps:$4 sm:$0xff]  }
  0x26   : > { %1819 = vmatprep.subr.bf16.mxu0 %v5160_v20  ;;  %1983 = vmatprep.subr.bf16.mxu1 %v5162_v21  ;;  %v5212_v56 = vld [vmem:[%s7755_s2 + $0x1a0] ss:$16 sps:$4 sm:$0xff]   ;;  %v5213_v57 = vld [vmem:[%s7755_s2 + $0x1a8] ss:$16 sps:$4 sm:$0xff]   ;;  %v5214_v58 = vld [vmem:[%s7755_s2 + $0x1c4] ss:$16 sps:$4 sm:$0xff]  }
  0x27   : > { %s6223_s23 = scalar_lea.vmem %s7774_s0, %s5083_s25  ;;  %v5216_v59 = vld [vmem:[%s7755_s2 + $0x1cc] ss:$16 sps:$4 sm:$0xff]   ;;  %v5218_v60 = vld [vmem:[%s7755_s2 + $0x1c0] ss:$16 sps:$4 sm:$0xff]   ;;  %v5219_v61 = vld [vmem:[%s7755_s2 + $0x1c8] ss:$16 sps:$4 sm:$0xff]  }
  0x28   : > { %v414_v46 = vld [vmem:[%s6223_s23] sm:$0xff]  ;;  %v5222_v63 = vld [vmem:[%s7755_s2 + $0x1ec] ss:$16 sps:$4 sm:$0xff]   ;;  %v5225_v1 = vld [vmem:[%s7755_s2 + $0x1e8] ss:$16 sps:$4 sm:$0xff]   ;;  %s4507_s13 = sshll.u32 %s6193_s12, 3 }
  0x29   : > { %1820 = vmatpush1.bf16.msra.mxu0 %v5164_v22  ;;  %1984 = vmatpush1.bf16.msra.mxu1 %v5165_v23  ;;  %v4509_v48 = vcombine.high %v414_v46, %v414_v46  ;;  %v5220_v62 = vld [vmem:[%s7755_s2 + $0x1e4] ss:$16 sps:$4 sm:$0xff]   ;;  %v5224_v0 = vld [vmem:[%s7755_s2 + $0x1e0] ss:$16 sps:$4 sm:$0xff]   ;;  %v5233_v3 = vld [vmem:[%s7755_s2 + $0x20c] ss:$16 sps:$4 sm:$0xff]   ;;  %v4508_v4 = vcombine.low %v414_v46, %v414_v46  ;;  %s412_s19 = scalar_lea.vmem %s7754_s1, %s4507_s13 }
  0x2a   : > { %1821 = vmatprep.subr.bf16.mxu0 %v5166_v24  ;;  %1985 = vmatprep.subr.bf16.mxu1 %v5168_v25  ;;  %v5230_v2 = vld [vmem:[%s7755_s2 + $0x204] ss:$16 sps:$4 sm:$0xff]   ;;  %v5228_v5 = vld [vmem:[%s7755_s2 + $0x200] ss:$16 sps:$4 sm:$0xff]   ;;  %v5231_v6 = vld [vmem:[%s7755_s2 + $0x208] ss:$16 sps:$4 sm:$0xff]  }
  0x2b   : > { %1841 = vmatprep.mubr.bf16.mxu0 %v4509_v48  ;;  %2005 = vmatprep.mubr.bf16.mxu1 %v4509_v48  ;;  %v5236_v7 = vld [vmem:[%s7755_s2 + $0x224] ss:$16 sps:$4 sm:$0xff]   ;;  %v5239_v8 = vld [vmem:[%s7755_s2 + $0x22c] ss:$16 sps:$4 sm:$0xff]   ;;  %v5234_v9 = vld [vmem:[%s7755_s2 + $0x220] ss:$16 sps:$4 sm:$0xff]  }
  0x2c   : > { %v5237_v10 = vld [vmem:[%s7755_s2 + $0x228] ss:$16 sps:$4 sm:$0xff]   ;;  %v5242_v11 = vld [vmem:[%s7755_s2 + $0x244] ss:$16 sps:$4 sm:$0xff]   ;;  %v5245_v12 = vld [vmem:[%s7755_s2 + $0x24c] ss:$16 sps:$4 sm:$0xff]  }
  0x2d   : > { %1822 = vmatpush1.bf16.msra.mxu0 %v5170_v26  ;;  %1986 = vmatpush1.bf16.msra.mxu1 %v5171_v27  ;;  %v5240_v13 = vld [vmem:[%s7755_s2 + $0x240] ss:$16 sps:$4 sm:$0xff]   ;;  %v5243_v14 = vld [vmem:[%s7755_s2 + $0x248] ss:$16 sps:$4 sm:$0xff]   ;;  %v5248_v15 = vld [vmem:[%s7755_s2 + $0x264] ss:$16 sps:$4 sm:$0xff]  }
  0x2e   : > { %1823 = vmatprep.subr.bf16.mxu0 %v5172_v28  ;;  %1987 = vmatprep.subr.bf16.mxu1 %v5174_v29  ;;  %v5251_v16 = vld [vmem:[%s7755_s2 + $0x26c] ss:$16 sps:$4 sm:$0xff]   ;;  %v5246_v17 = vld [vmem:[%s7755_s2 + $0x260] ss:$16 sps:$4 sm:$0xff]   ;;  %v5249_v18 = vld [vmem:[%s7755_s2 + $0x268] ss:$16 sps:$4 sm:$0xff]  }
  0x2f   : > { %v5254_v19 = vld [vmem:[%s7755_s2 + $0x284] ss:$16 sps:$4 sm:$0xff]   ;;  %v5257_v20 = vld [vmem:[%s7755_s2 + $0x28c] ss:$16 sps:$4 sm:$0xff]   ;;  %v5252_v21 = vld [vmem:[%s7755_s2 + $0x280] ss:$16 sps:$4 sm:$0xff]  }
  0x30   : > { %v5255_v22 = vld [vmem:[%s7755_s2 + $0x288] ss:$16 sps:$4 sm:$0xff]   ;;  %v5260_v23 = vld [vmem:[%s7755_s2 + $0x2a4] ss:$16 sps:$4 sm:$0xff]   ;;  %v5263_v24 = vld [vmem:[%s7755_s2 + $0x2ac] ss:$16 sps:$4 sm:$0xff]  }
  0x31   : > { %1824 = vmatpush1.bf16.msra.mxu0 %v5176_v30  ;;  %1988 = vmatpush1.bf16.msra.mxu1 %v5177_v31  ;;  %v5258_v25 = vld [vmem:[%s7755_s2 + $0x2a0] ss:$16 sps:$4 sm:$0xff]   ;;  %v5261_v26 = vld [vmem:[%s7755_s2 + $0x2a8] ss:$16 sps:$4 sm:$0xff]   ;;  %v5266_v27 = vld [vmem:[%s7755_s2 + $0x2c4] ss:$16 sps:$4 sm:$0xff]  }
  0x32   : > { %1825 = vmatprep.subr.bf16.mxu0 %v5178_v32  ;;  %1989 = vmatprep.subr.bf16.mxu1 %v5180_v33  ;;  %v5269_v28 = vld [vmem:[%s7755_s2 + $0x2cc] ss:$16 sps:$4 sm:$0xff]   ;;  %v5264_v31 = vld [vmem:[%s7755_s2 + $0x2c0] ss:$16 sps:$4 sm:$0xff]   ;;  %v5267_v32 = vld [vmem:[%s7755_s2 + $0x2c8] ss:$16 sps:$4 sm:$0xff]  }
  0x33   : > { %v6365_v29 = vld [vmem:[%s6223_s23 + $0x8] sm:$0xff]  ;;  %v5272_v33 = vld [vmem:[%s7755_s2 + $0x2e4] ss:$16 sps:$4 sm:$0xff]   ;;  %s5007_s12 = sshll.u32 %s6056_s21, 8 }
  0x34   : > { %v4511_v30 = vcombine.high %v6365_v29, %v6365_v29  ;;  %v5293_v46 = vld [vmem:[%s7755_s2 + $0x34c] ss:$16 sps:$4 sm:$0xff]   ;;  %v5291_v48 = vld [vmem:[%s7755_s2 + $0x348] ss:$16 sps:$4 sm:$0xff]  }
  0x35   : > { %1826 = vmatpush1.bf16.msra.mxu0 %v5182_v34  ;;  %1990 = vmatpush1.bf16.msra.mxu1 %v5183_v35  ;;  %v5275_v34 = vld [vmem:[%s7755_s2 + $0x2ec] ss:$16 sps:$4 sm:$0xff]   ;;  %v5270_v35 = vld [vmem:[%s7755_s2 + $0x2e0] ss:$16 sps:$4 sm:$0xff]  }
  0x36   : > { %1827 = vmatprep.subr.bf16.mxu0 %v5184_v36  ;;  %1991 = vmatprep.subr.bf16.mxu1 %v5186_v37  ;;  %v5273_v36 = vld [vmem:[%s7755_s2 + $0x2e8] ss:$16 sps:$4 sm:$0xff]   ;;  %v5278_v37 = vld [vmem:[%s7755_s2 + $0x304] ss:$16 sps:$4 sm:$0xff]  }
  0x39   : > { %1828 = vmatpush1.bf16.msra.mxu0 %v5188_v38  ;;  %1992 = vmatpush1.bf16.msra.mxu1 %v5189_v39  ;;  %v5281_v38 = vld [vmem:[%s7755_s2 + $0x30c] ss:$16 sps:$4 sm:$0xff]   ;;  %v5276_v39 = vld [vmem:[%s7755_s2 + $0x300] ss:$16 sps:$4 sm:$0xff]  }
  0x3a   : > { %1829 = vmatprep.subr.bf16.mxu0 %v5190_v40  ;;  %1993 = vmatprep.subr.bf16.mxu1 %v5192_v41  ;;  %v5279_v40 = vld [vmem:[%s7755_s2 + $0x308] ss:$16 sps:$4 sm:$0xff]   ;;  %v5284_v41 = vld [vmem:[%s7755_s2 + $0x324] ss:$16 sps:$4 sm:$0xff]  }
  0x3d   : > { %1830 = vmatpush1.bf16.msra.mxu0 %v5194_v42  ;;  %1994 = vmatpush1.bf16.msra.mxu1 %v5195_v43  ;;  %v5287_v42 = vld [vmem:[%s7755_s2 + $0x32c] ss:$16 sps:$4 sm:$0xff]   ;;  %v5282_v43 = vld [vmem:[%s7755_s2 + $0x320] ss:$16 sps:$4 sm:$0xff]  }
  0x3e   : > { %1831 = vmatprep.subr.bf16.mxu0 %v5196_v44  ;;  %1995 = vmatprep.subr.bf16.mxu1 %v5198_v45  ;;  %v5285_v44 = vld [vmem:[%s7755_s2 + $0x328] ss:$16 sps:$4 sm:$0xff]   ;;  %v5290_v45 = vld [vmem:[%s7755_s2 + $0x344] ss:$16 sps:$4 sm:$0xff]  }
  0x41   : > { %1832 = vmatpush1.bf16.msra.mxu0 %v5200_v47  ;;  %1996 = vmatpush1.bf16.msra.mxu1 %v5201_v49  ;;  %v5288_v47 = vld [vmem:[%s7755_s2 + $0x340] ss:$16 sps:$4 sm:$0xff]   ;;  %v5296_v49 = vld [vmem:[%s7755_s2 + $0x364] ss:$16 sps:$4 sm:$0xff]  }
  0x42   : > { %1833 = vmatprep.subr.bf16.mxu0 %v5202_v50  ;;  %1997 = vmatprep.subr.bf16.mxu1 %v5204_v51  ;;  %v5299_v50 = vld [vmem:[%s7755_s2 + $0x36c] ss:$16 sps:$4 sm:$0xff]   ;;  %v5294_v51 = vld [vmem:[%s7755_s2 + $0x360] ss:$16 sps:$4 sm:$0xff]  }
  0x45   : > { %1834 = vmatpush1.bf16.msra.mxu0 %v5206_v52  ;;  %1998 = vmatpush1.bf16.msra.mxu1 %v5207_v53  ;;  %v5297_v52 = vld [vmem:[%s7755_s2 + $0x368] ss:$16 sps:$4 sm:$0xff]   ;;  %v5302_v53 = vld [vmem:[%s7755_s2 + $0x384] ss:$16 sps:$4 sm:$0xff]  }
  0x46   : > { %1835 = vmatprep.subr.bf16.mxu0 %v5208_v54  ;;  %1999 = vmatprep.subr.bf16.mxu1 %v5210_v55  ;;  %v5305_v54 = vld [vmem:[%s7755_s2 + $0x38c] ss:$16 sps:$4 sm:$0xff]   ;;  %v5300_v55 = vld [vmem:[%s7755_s2 + $0x380] ss:$16 sps:$4 sm:$0xff]  }
  0x49   : > { %1836 = vmatpush1.bf16.msra.mxu0 %v5212_v56  ;;  %2000 = vmatpush1.bf16.msra.mxu1 %v5213_v57  ;;  %v5303_v56 = vld [vmem:[%s7755_s2 + $0x388] ss:$16 sps:$4 sm:$0xff]   ;;  %v5308_v57 = vld [vmem:[%s7755_s2 + $0x3a4] ss:$16 sps:$4 sm:$0xff]  }
  0x4a   : > { %1837 = vmatprep.subr.bf16.mxu0 %v5214_v58  ;;  %2001 = vmatprep.subr.bf16.mxu1 %v5216_v59  ;;  %v5311_v58 = vld [vmem:[%s7755_s2 + $0x3ac] ss:$16 sps:$4 sm:$0xff]   ;;  %v5306_v59 = vld [vmem:[%s7755_s2 + $0x3a0] ss:$16 sps:$4 sm:$0xff]  }
  0x4d   : > { %1838 = vmatpush1.bf16.msra.mxu0 %v5218_v60  ;;  %2002 = vmatpush1.bf16.msra.mxu1 %v5219_v61  ;;  %v5309_v60 = vld [vmem:[%s7755_s2 + $0x3a8] ss:$16 sps:$4 sm:$0xff]   ;;  %v5314_v61 = vld [vmem:[%s7755_s2 + $0x3c4] ss:$16 sps:$4 sm:$0xff]  }
  0x4e   : > { %1839 = vmatprep.subr.bf16.mxu0 %v5220_v62  ;;  %2003 = vmatprep.subr.bf16.mxu1 %v5222_v63  ;;  %v5317_v62 = vld [vmem:[%s7755_s2 + $0x3cc] ss:$16 sps:$4 sm:$0xff]   ;;  %v5312_v63 = vld [vmem:[%s7755_s2 + $0x3c0] ss:$16 sps:$4 sm:$0xff]  }
  0x51   : > { %1840 = vmatpush1.bf16.msra.mxu0 %v5224_v0  ;;  %2004 = vmatpush1.bf16.msra.mxu1 %v5225_v1  ;;  %v5315_v0 = vld [vmem:[%s7755_s2 + $0x3c8] ss:$16 sps:$4 sm:$0xff]   ;;  %v5320_v1 = vld [vmem:[%s7755_s2 + $0x3e4] ss:$16 sps:$4 sm:$0xff]  }
  0x52   : > { %1850 = vmatprep.subr.bf16.mxu0 %v5230_v2  ;;  %2014 = vmatprep.subr.bf16.mxu1 %v5233_v3  ;;  %v5323_v2 = vld [vmem:[%s7755_s2 + $0x3ec] ss:$16 sps:$4 sm:$0xff]   ;;  %v5318_v3 = vld [vmem:[%s7755_s2 + $0x3e0] ss:$16 sps:$4 sm:$0xff]  }
  0x54   : > { %1842 = vmatmul.mubr.bf16.vlgmr.msra.gmra.mrb[0].mxu0 %v4508_v4  ;;  %2006 = vmatmul.mubr.bf16.vlgmr.msra.gmra.mrb[0].mxu1 %v4508_v4  ;;  %v5321_v4 = vld [vmem:[%s7755_s2 + $0x3e8] ss:$16 sps:$4 sm:$0xff]  }
  0x55   : > { %1851 = vmatpush1.bf16.msra.mxu0 %v5228_v5  ;;  %2015 = vmatpush1.bf16.msra.mxu1 %v5231_v6  ;;  %v5328_v5 = vld [vmem:[%s7755_s2 + $0x404] ss:$16 sps:$4 sm:$0xff]   ;;  %v5331_v6 = vld [vmem:[%s7755_s2 + $0x40c] ss:$16 sps:$4 sm:$0xff]  }
  0x56   : > { %1852 = vmatprep.subr.bf16.mxu0 %v5236_v7  ;;  %2016 = vmatprep.subr.bf16.mxu1 %v5239_v8  ;;  %v4510_v7 = vcombine.low %v6365_v29, %v6365_v29  ;;  %v5326_v8 = vld [vmem:[%s7755_s2 + $0x400] ss:$16 sps:$4 sm:$0xff]   ;;  %v5361_v29 = vld [vmem:[%s7755_s2 + $0x4ac] ss:$16 sps:$4 sm:$0xff]  }
  0x57   : > { %1882 = vmatprep.mubr.bf16.mxu0 %v4511_v30  ;;  %2046 = vmatprep.mubr.bf16.mxu1 %v4511_v30  ;;  %v5356_v30 = vld [vmem:[%s7755_s2 + $0x4a0] ss:$16 sps:$4 sm:$0xff]  }
  0x59   : > { %1853 = vmatpush1.bf16.msra.mxu0 %v5234_v9  ;;  %2017 = vmatpush1.bf16.msra.mxu1 %v5237_v10  ;;  %v5329_v9 = vld [vmem:[%s7755_s2 + $0x408] ss:$16 sps:$4 sm:$0xff]   ;;  %v5334_v10 = vld [vmem:[%s7755_s2 + $0x424] ss:$16 sps:$4 sm:$0xff]  }
  0x5a   : > { %1854 = vmatprep.subr.bf16.mxu0 %v5242_v11  ;;  %2018 = vmatprep.subr.bf16.mxu1 %v5245_v12  ;;  %v6501_v11 = vld [vmem:[%s6223_s23 + $0x10] sm:$0xff]  ;;  %v5337_v12 = vld [vmem:[%s7755_s2 + $0x42c] ss:$16 sps:$4 sm:$0xff]  }
  0x5d   : > { %1855 = vmatpush1.bf16.msra.mxu0 %v5240_v13  ;;  %2019 = vmatpush1.bf16.msra.mxu1 %v5243_v14  ;;  %v4513_v13 = vcombine.high %v6501_v11, %v6501_v11  ;;  %v5332_v14 = vld [vmem:[%s7755_s2 + $0x420] ss:$16 sps:$4 sm:$0xff]  }
  0x5e   : > { %1856 = vmatprep.subr.bf16.mxu0 %v5248_v15  ;;  %2020 = vmatprep.subr.bf16.mxu1 %v5251_v16  ;;  %v5335_v15 = vld [vmem:[%s7755_s2 + $0x428] ss:$16 sps:$4 sm:$0xff]   ;;  %v5340_v16 = vld [vmem:[%s7755_s2 + $0x444] ss:$16 sps:$4 sm:$0xff]  }
  0x61   : > { %1857 = vmatpush1.bf16.msra.mxu0 %v5246_v17  ;;  %2021 = vmatpush1.bf16.msra.mxu1 %v5249_v18  ;;  %v5343_v17 = vld [vmem:[%s7755_s2 + $0x44c] ss:$16 sps:$4 sm:$0xff]   ;;  %v5338_v18 = vld [vmem:[%s7755_s2 + $0x440] ss:$16 sps:$4 sm:$0xff]  }
  0x62   : > { %1858 = vmatprep.subr.bf16.mxu0 %v5254_v19  ;;  %2022 = vmatprep.subr.bf16.mxu1 %v5257_v20  ;;  %v5341_v19 = vld [vmem:[%s7755_s2 + $0x448] ss:$16 sps:$4 sm:$0xff]   ;;  %v5346_v20 = vld [vmem:[%s7755_s2 + $0x464] ss:$16 sps:$4 sm:$0xff]  }
  0x65   : > { %1859 = vmatpush1.bf16.msra.mxu0 %v5252_v21  ;;  %2023 = vmatpush1.bf16.msra.mxu1 %v5255_v22  ;;  %v5349_v21 = vld [vmem:[%s7755_s2 + $0x46c] ss:$16 sps:$4 sm:$0xff]   ;;  %v5344_v22 = vld [vmem:[%s7755_s2 + $0x460] ss:$16 sps:$4 sm:$0xff]  }
  0x66   : > { %1860 = vmatprep.subr.bf16.mxu0 %v5260_v23  ;;  %2024 = vmatprep.subr.bf16.mxu1 %v5263_v24  ;;  %v5347_v23 = vld [vmem:[%s7755_s2 + $0x468] ss:$16 sps:$4 sm:$0xff]   ;;  %v5352_v24 = vld [vmem:[%s7755_s2 + $0x484] ss:$16 sps:$4 sm:$0xff]  }
  0x69   : > { %1861 = vmatpush1.bf16.msra.mxu0 %v5258_v25  ;;  %2025 = vmatpush1.bf16.msra.mxu1 %v5261_v26  ;;  %v5355_v25 = vld [vmem:[%s7755_s2 + $0x48c] ss:$16 sps:$4 sm:$0xff]   ;;  %v5350_v26 = vld [vmem:[%s7755_s2 + $0x480] ss:$16 sps:$4 sm:$0xff]  }
  0x6a   : > { %1862 = vmatprep.subr.bf16.mxu0 %v5266_v27  ;;  %2026 = vmatprep.subr.bf16.mxu1 %v5269_v28  ;;  %v5353_v27 = vld [vmem:[%s7755_s2 + $0x488] ss:$16 sps:$4 sm:$0xff]   ;;  %v5358_v28 = vld [vmem:[%s7755_s2 + $0x4a4] ss:$16 sps:$4 sm:$0xff]  }
  0x6d   : > { %1863 = vmatpush1.bf16.msra.mxu0 %v5264_v31  ;;  %2027 = vmatpush1.bf16.msra.mxu1 %v5267_v32  ;;  %v5359_v31 = vld [vmem:[%s7755_s2 + $0x4a8] ss:$16 sps:$4 sm:$0xff]   ;;  %v5364_v32 = vld [vmem:[%s7755_s2 + $0x4c4] ss:$16 sps:$4 sm:$0xff]  }
  0x6e   : > { %1864 = vmatprep.subr.bf16.mxu0 %v5272_v33  ;;  %2028 = vmatprep.subr.bf16.mxu1 %v5275_v34  ;;  %v5367_v33 = vld [vmem:[%s7755_s2 + $0x4cc] ss:$16 sps:$4 sm:$0xff]   ;;  %v5362_v34 = vld [vmem:[%s7755_s2 + $0x4c0] ss:$16 sps:$4 sm:$0xff]  }
  0x71   : > { %1865 = vmatpush1.bf16.msra.mxu0 %v5270_v35  ;;  %2029 = vmatpush1.bf16.msra.mxu1 %v5273_v36  ;;  %v5365_v35 = vld [vmem:[%s7755_s2 + $0x4c8] ss:$16 sps:$4 sm:$0xff]   ;;  %v5370_v36 = vld [vmem:[%s7755_s2 + $0x4e4] ss:$16 sps:$4 sm:$0xff]  }
  0x72   : > { %1866 = vmatprep.subr.bf16.mxu0 %v5278_v37  ;;  %2030 = vmatprep.subr.bf16.mxu1 %v5281_v38  ;;  %v5373_v37 = vld [vmem:[%s7755_s2 + $0x4ec] ss:$16 sps:$4 sm:$0xff]   ;;  %v5368_v38 = vld [vmem:[%s7755_s2 + $0x4e0] ss:$16 sps:$4 sm:$0xff]  }
  0x75   : > { %1867 = vmatpush1.bf16.msra.mxu0 %v5276_v39  ;;  %2031 = vmatpush1.bf16.msra.mxu1 %v5279_v40  ;;  %v5371_v39 = vld [vmem:[%s7755_s2 + $0x4e8] ss:$16 sps:$4 sm:$0xff]   ;;  %v5376_v40 = vld [vmem:[%s7755_s2 + $0x504] ss:$16 sps:$4 sm:$0xff]  }
  0x76   : > { %1868 = vmatprep.subr.bf16.mxu0 %v5284_v41  ;;  %2032 = vmatprep.subr.bf16.mxu1 %v5287_v42  ;;  %v5379_v41 = vld [vmem:[%s7755_s2 + $0x50c] ss:$16 sps:$4 sm:$0xff]   ;;  %v5374_v42 = vld [vmem:[%s7755_s2 + $0x500] ss:$16 sps:$4 sm:$0xff]  }
  0x79   : > { %1869 = vmatpush1.bf16.msra.mxu0 %v5282_v43  ;;  %2033 = vmatpush1.bf16.msra.mxu1 %v5285_v44  ;;  %v5377_v43 = vld [vmem:[%s7755_s2 + $0x508] ss:$16 sps:$4 sm:$0xff]   ;;  %v5382_v44 = vld [vmem:[%s7755_s2 + $0x524] ss:$16 sps:$4 sm:$0xff]  }
  0x7a   : > { %1870 = vmatprep.subr.bf16.mxu0 %v5290_v45  ;;  %2034 = vmatprep.subr.bf16.mxu1 %v5293_v46  ;;  %v5385_v45 = vld [vmem:[%s7755_s2 + $0x52c] ss:$16 sps:$4 sm:$0xff]   ;;  %v5380_v46 = vld [vmem:[%s7755_s2 + $0x520] ss:$16 sps:$4 sm:$0xff]  }
  0x7d   : > { %1871 = vmatpush1.bf16.msra.mxu0 %v5288_v47  ;;  %2035 = vmatpush1.bf16.msra.mxu1 %v5291_v48  ;;  %v5383_v47 = vld [vmem:[%s7755_s2 + $0x528] ss:$16 sps:$4 sm:$0xff]   ;;  %v5388_v48 = vld [vmem:[%s7755_s2 + $0x544] ss:$16 sps:$4 sm:$0xff]  }
  0x7e   : > { %1872 = vmatprep.subr.bf16.mxu0 %v5296_v49  ;;  %2036 = vmatprep.subr.bf16.mxu1 %v5299_v50  ;;  %v5391_v49 = vld [vmem:[%s7755_s2 + $0x54c] ss:$16 sps:$4 sm:$0xff]   ;;  %v5386_v50 = vld [vmem:[%s7755_s2 + $0x540] ss:$16 sps:$4 sm:$0xff]  }
  0x81   : > { %1873 = vmatpush1.bf16.msra.mxu0 %v5294_v51  ;;  %2037 = vmatpush1.bf16.msra.mxu1 %v5297_v52  ;;  %v5389_v51 = vld [vmem:[%s7755_s2 + $0x548] ss:$16 sps:$4 sm:$0xff]   ;;  %v5394_v52 = vld [vmem:[%s7755_s2 + $0x564] ss:$16 sps:$4 sm:$0xff]  }
  0x82   : > { %1874 = vmatprep.subr.bf16.mxu0 %v5302_v53  ;;  %2038 = vmatprep.subr.bf16.mxu1 %v5305_v54  ;;  %v5397_v53 = vld [vmem:[%s7755_s2 + $0x56c] ss:$16 sps:$4 sm:$0xff]   ;;  %v5392_v54 = vld [vmem:[%s7755_s2 + $0x560] ss:$16 sps:$4 sm:$0xff]  }
  0x85   : > { %1875 = vmatpush1.bf16.msra.mxu0 %v5300_v55  ;;  %2039 = vmatpush1.bf16.msra.mxu1 %v5303_v56  ;;  %v5395_v55 = vld [vmem:[%s7755_s2 + $0x568] ss:$16 sps:$4 sm:$0xff]   ;;  %v5400_v56 = vld [vmem:[%s7755_s2 + $0x584] ss:$16 sps:$4 sm:$0xff]  }
  0x86   : > { %1876 = vmatprep.subr.bf16.mxu0 %v5308_v57  ;;  %2040 = vmatprep.subr.bf16.mxu1 %v5311_v58  ;;  %v5403_v57 = vld [vmem:[%s7755_s2 + $0x58c] ss:$16 sps:$4 sm:$0xff]   ;;  %v5398_v58 = vld [vmem:[%s7755_s2 + $0x580] ss:$16 sps:$4 sm:$0xff]  }
  0x89   : > { %1877 = vmatpush1.bf16.msra.mxu0 %v5306_v59  ;;  %2041 = vmatpush1.bf16.msra.mxu1 %v5309_v60  ;;  %v5401_v59 = vld [vmem:[%s7755_s2 + $0x588] ss:$16 sps:$4 sm:$0xff]   ;;  %v5406_v60 = vld [vmem:[%s7755_s2 + $0x5a4] ss:$16 sps:$4 sm:$0xff]  }
  0x8a   : > { %1878 = vmatprep.subr.bf16.mxu0 %v5314_v61  ;;  %2042 = vmatprep.subr.bf16.mxu1 %v5317_v62  ;;  %v5409_v61 = vld [vmem:[%s7755_s2 + $0x5ac] ss:$16 sps:$4 sm:$0xff]   ;;  %v5404_v62 = vld [vmem:[%s7755_s2 + $0x5a0] ss:$16 sps:$4 sm:$0xff]  }
  0x8d   : > { %1879 = vmatpush1.bf16.msra.mxu0 %v5312_v63  ;;  %2043 = vmatpush1.bf16.msra.mxu1 %v5315_v0  ;;  %v5407_v63 = vld [vmem:[%s7755_s2 + $0x5a8] ss:$16 sps:$4 sm:$0xff]   ;;  %v5412_v0 = vld [vmem:[%s7755_s2 + $0x5c4] ss:$16 sps:$4 sm:$0xff]  }
  0x8e   : > { %1880 = vmatprep.subr.bf16.mxu0 %v5320_v1  ;;  %2044 = vmatprep.subr.bf16.mxu1 %v5323_v2  ;;  %v5415_v1 = vld [vmem:[%s7755_s2 + $0x5cc] ss:$16 sps:$4 sm:$0xff]   ;;  %v5410_v2 = vld [vmem:[%s7755_s2 + $0x5c0] ss:$16 sps:$4 sm:$0xff]  }
  0x91   : > { %1881 = vmatpush1.bf16.msra.mxu0 %v5318_v3  ;;  %2045 = vmatpush1.bf16.msra.mxu1 %v5321_v4  ;;  %v5413_v3 = vld [vmem:[%s7755_s2 + $0x5c8] ss:$16 sps:$4 sm:$0xff]   ;;  %v5418_v4 = vld [vmem:[%s7755_s2 + $0x5e4] ss:$16 sps:$4 sm:$0xff]  }
  0x92   : > { %1891 = vmatprep.subr.bf16.mxu0 %v5328_v5  ;;  %2055 = vmatprep.subr.bf16.mxu1 %v5331_v6  ;;  %v5421_v5 = vld [vmem:[%s7755_s2 + $0x5ec] ss:$16 sps:$4 sm:$0xff]   ;;  %v5416_v6 = vld [vmem:[%s7755_s2 + $0x5e0] ss:$16 sps:$4 sm:$0xff]  }
  0x94   : > { %1883 = vmatmul.mubr.bf16.vlgmr.msra.gmra.mrb[0].mxu0 %v4510_v7  ;;  %2047 = vmatmul.mubr.bf16.vlgmr.msra.gmra.mrb[0].mxu1 %v4510_v7  ;;  %v5419_v7 = vld [vmem:[%s7755_s2 + $0x5e8] ss:$16 sps:$4 sm:$0xff]  }
  0x95   : > { %1892 = vmatpush1.bf16.msra.mxu0 %v5326_v8  ;;  %2056 = vmatpush1.bf16.msra.mxu1 %v5329_v9  ;;  %v5426_v8 = vld [vmem:[%s7755_s2 + $0x604] ss:$16 sps:$4 sm:$0xff]   ;;  %v5429_v9 = vld [vmem:[%s7755_s2 + $0x60c] ss:$16 sps:$4 sm:$0xff]  }
  0x96   : > { %1893 = vmatprep.subr.bf16.mxu0 %v5334_v10  ;;  %2057 = vmatprep.subr.bf16.mxu1 %v5337_v12  ;;  %v5424_v10 = vld [vmem:[%s7755_s2 + $0x600] ss:$16 sps:$4 sm:$0xff]   ;;  %v5427_v12 = vld [vmem:[%s7755_s2 + $0x608] ss:$16 sps:$4 sm:$0xff]  }
  0x97   : > { %1923 = vmatprep.mubr.bf16.mxu0 %v4513_v13  ;;  %2087 = vmatprep.mubr.bf16.mxu1 %v4513_v13  ;;  %v4512_v13 = vcombine.low %v6501_v11, %v6501_v11  ;;  %v5433_v11 = vld [vmem:[%s7755_s2 + $0x628] ss:$16 sps:$4 sm:$0xff]  }
  0x99   : > { %1894 = vmatpush1.bf16.msra.mxu0 %v5332_v14  ;;  %2058 = vmatpush1.bf16.msra.mxu1 %v5335_v15  ;;  %v5432_v14 = vld [vmem:[%s7755_s2 + $0x624] ss:$16 sps:$4 sm:$0xff]   ;;  %v5435_v15 = vld [vmem:[%s7755_s2 + $0x62c] ss:$16 sps:$4 sm:$0xff]  }
  0x9a   : > { %1895 = vmatprep.subr.bf16.mxu0 %v5340_v16  ;;  %2059 = vmatprep.subr.bf16.mxu1 %v5343_v17  ;;  %v5430_v16 = vld [vmem:[%s7755_s2 + $0x620] ss:$16 sps:$4 sm:$0xff]   ;;  %v5438_v17 = vld [vmem:[%s7755_s2 + $0x644] ss:$16 sps:$4 sm:$0xff]  }
  0x9d   : > { %1896 = vmatpush1.bf16.msra.mxu0 %v5338_v18  ;;  %2060 = vmatpush1.bf16.msra.mxu1 %v5341_v19  ;;  %v5441_v18 = vld [vmem:[%s7755_s2 + $0x64c] ss:$16 sps:$4 sm:$0xff]   ;;  %v5436_v19 = vld [vmem:[%s7755_s2 + $0x640] ss:$16 sps:$4 sm:$0xff]  }
  0x9e   : > { %1897 = vmatprep.subr.bf16.mxu0 %v5346_v20  ;;  %2061 = vmatprep.subr.bf16.mxu1 %v5349_v21  ;;  %v5439_v20 = vld [vmem:[%s7755_s2 + $0x648] ss:$16 sps:$4 sm:$0xff]   ;;  %v5972_v21 = vmov 0  }
  0xa1   : > { %1898 = vmatpush1.bf16.msra.mxu0 %v5344_v22  ;;  %2062 = vmatpush1.bf16.msra.mxu1 %v5347_v23  ;;  %v5444_v22 = vld [vmem:[%s7755_s2 + $0x664] ss:$16 sps:$4 sm:$0xff]   ;;  %v5447_v23 = vld [vmem:[%s7755_s2 + $0x66c] ss:$16 sps:$4 sm:$0xff]  }
  0xa2   : > { %1899 = vmatprep.subr.bf16.mxu0 %v5352_v24  ;;  %2063 = vmatprep.subr.bf16.mxu1 %v5355_v25  ;;  %v5442_v24 = vld [vmem:[%s7755_s2 + $0x660] ss:$16 sps:$4 sm:$0xff]   ;;  %v5445_v25 = vld [vmem:[%s7755_s2 + $0x668] ss:$16 sps:$4 sm:$0xff]  }
  0xa5   : > { %1900 = vmatpush1.bf16.msra.mxu0 %v5350_v26  ;;  %2064 = vmatpush1.bf16.msra.mxu1 %v5353_v27  ;;  %v5450_v26 = vld [vmem:[%s7755_s2 + $0x684] ss:$16 sps:$4 sm:$0xff]   ;;  %v5453_v27 = vld [vmem:[%s7755_s2 + $0x68c] ss:$16 sps:$4 sm:$0xff]  }
  0xa6   : > { %1901 = vmatprep.subr.bf16.mxu0 %v5358_v28  ;;  %2065 = vmatprep.subr.bf16.mxu1 %v5361_v29  ;;  %v5448_v28 = vld [vmem:[%s7755_s2 + $0x680] ss:$16 sps:$4 sm:$0xff]   ;;  %v5451_v29 = vld [vmem:[%s7755_s2 + $0x688] ss:$16 sps:$4 sm:$0xff]  }
  0xa9   : > { %1902 = vmatpush1.bf16.msra.mxu0 %v5356_v30  ;;  %2066 = vmatpush1.bf16.msra.mxu1 %v5359_v31  ;;  %v5456_v30 = vld [vmem:[%s7755_s2 + $0x6a4] ss:$16 sps:$4 sm:$0xff]   ;;  %v5459_v31 = vld [vmem:[%s7755_s2 + $0x6ac] ss:$16 sps:$4 sm:$0xff]  }
  0xaa   : > { %1903 = vmatprep.subr.bf16.mxu0 %v5364_v32  ;;  %2067 = vmatprep.subr.bf16.mxu1 %v5367_v33  ;;  %v5454_v32 = vld [vmem:[%s7755_s2 + $0x6a0] ss:$16 sps:$4 sm:$0xff]   ;;  %v5457_v33 = vld [vmem:[%s7755_s2 + $0x6a8] ss:$16 sps:$4 sm:$0xff]  }
  0xad   : > { %1904 = vmatpush1.bf16.msra.mxu0 %v5362_v34  ;;  %2068 = vmatpush1.bf16.msra.mxu1 %v5365_v35  ;;  %v5462_v34 = vld [vmem:[%s7755_s2 + $0x6c4] ss:$16 sps:$4 sm:$0xff]   ;;  %v5465_v35 = vld [vmem:[%s7755_s2 + $0x6cc] ss:$16 sps:$4 sm:$0xff]  }
  0xae   : > { %1905 = vmatprep.subr.bf16.mxu0 %v5370_v36  ;;  %2069 = vmatprep.subr.bf16.mxu1 %v5373_v37  ;;  %v5460_v36 = vld [vmem:[%s7755_s2 + $0x6c0] ss:$16 sps:$4 sm:$0xff]   ;;  %v5463_v37 = vld [vmem:[%s7755_s2 + $0x6c8] ss:$16 sps:$4 sm:$0xff]  }
  0xb1   : > { %1906 = vmatpush1.bf16.msra.mxu0 %v5368_v38  ;;  %2070 = vmatpush1.bf16.msra.mxu1 %v5371_v39  ;;  %v5468_v38 = vld [vmem:[%s7755_s2 + $0x6e4] ss:$16 sps:$4 sm:$0xff]   ;;  %v5471_v39 = vld [vmem:[%s7755_s2 + $0x6ec] ss:$16 sps:$4 sm:$0xff]  }
  0xb2   : > { %1907 = vmatprep.subr.bf16.mxu0 %v5376_v40  ;;  %2071 = vmatprep.subr.bf16.mxu1 %v5379_v41  ;;  %v5466_v40 = vld [vmem:[%s7755_s2 + $0x6e0] ss:$16 sps:$4 sm:$0xff]   ;;  %v5469_v41 = vld [vmem:[%s7755_s2 + $0x6e8] ss:$16 sps:$4 sm:$0xff]  }
  0xb5   : > { %1908 = vmatpush1.bf16.msra.mxu0 %v5374_v42  ;;  %2072 = vmatpush1.bf16.msra.mxu1 %v5377_v43  ;;  %v5475_v42 = vld [vmem:[%s7757_s4 + $0x4] ss:$8 sps:$4 sm:$0xff]   ;;  %v5472_v43 = vld [vmem:[%s6223_s23 + $0x18] ss:$0 sps:$4 sm:$0xff]   ;;  %s7092_s23 = sand.u32 1, %s5962_s18  }
  0xb6   : > { %1909 = vmatprep.subr.bf16.mxu0 %v5382_v44  ;;  %2073 = vmatprep.subr.bf16.mxu1 %v5385_v45  ;;  %v5473_v44 = vld [vmem:[%s7757_s4] ss:$8 sps:$4 sm:$0xff]   ;;  %v5478_v45 = vld [vmem:[%s7757_s4 + $0x14] ss:$8 sps:$4 sm:$0xff]   ;;  %s4505_s0 = sshll.u32 %s7092_s23, 4  ;;  %s4370_s14 = scalar_lea.sflag [#allocation5], %s7092_s23 }
  0xb7   : > { %s7100_s26 = scalar_lea.vmem [#allocation4], %s4505_s0  ;;  %s7662_s0 = scalar_lea.hbm %s7764_s11, %s5007_s12 }
  0xb8   : > { %s4398_s13 = sshll.u32 %s7100_s26, 4  ;;  %s7665_s13 = int_to_ptr.vmem [resolvable:$true] %s4398_s13 }
  0xb9   : > { %1910 = vmatpush1.bf16.msra.mxu0 %v5380_v46  ;;  %2074 = vmatpush1.bf16.msra.mxu1 %v5383_v47  ;;  %v5476_v46 = vld [vmem:[%s7757_s4 + $0x10] ss:$8 sps:$4 sm:$0xff]   ;;  %v5481_v47 = vld [vmem:[%s7757_s4 + $0x24] ss:$8 sps:$4 sm:$0xff]   ;;  %s5876_s15 = scalar_lea.vmem %s7665_s13, 256 }
  0xba   : > { %1911 = vmatprep.subr.bf16.mxu0 %v5388_v48  ;;  %2075 = vmatprep.subr.bf16.mxu1 %v5391_v49  ;;  %v5479_v48 = vld [vmem:[%s7757_s4 + $0x20] ss:$8 sps:$4 sm:$0xff]   ;;  %v5484_v49 = vld [vmem:[%s7757_s4 + $0x34] ss:$8 sps:$4 sm:$0xff]   ;;  %p5877_p11 = scmp.ne.s32.totalorder %s7665_s13, %s5876_s15 }
  0xbc   : > { %p5878_p12 = pnand %p5877_p11, %p6073_p5 }
  0xbd   : > { %1912 = vmatpush1.bf16.msra.mxu0 %v5386_v50  ;;  %2076 = vmatpush1.bf16.msra.mxu1 %v5389_v51  ;;  %v5482_v50 = vld [vmem:[%s7757_s4 + $0x30] ss:$8 sps:$4 sm:$0xff]   ;;  %v5487_v51 = vld [vmem:[%s7757_s4 + $0x44] ss:$8 sps:$4 sm:$0xff]  }
  0xbe   : > { %1913 = vmatprep.subr.bf16.mxu0 %v5394_v52  ;;  %2077 = vmatprep.subr.bf16.mxu1 %v5397_v53  ;;  %v5485_v52 = vld [vmem:[%s7757_s4 + $0x40] ss:$8 sps:$4 sm:$0xff]   ;;  %v5490_v53 = vld [vmem:[%s7757_s4 + $0x54] ss:$8 sps:$4 sm:$0xff]   ;;  %p5879_p13 = pneg %p5878_p12 }
  0xc1   : > { %1914 = vmatpush1.bf16.msra.mxu0 %v5392_v54  ;;  %2078 = vmatpush1.bf16.msra.mxu1 %v5395_v55  ;;  %v5488_v54 = vld [vmem:[%s7757_s4 + $0x50] ss:$8 sps:$4 sm:$0xff]   ;;  %v5493_v55 = vld [vmem:[%s7757_s4 + $0x64] ss:$8 sps:$4 sm:$0xff]  }
  0xc2   : > { %1915 = vmatprep.subr.bf16.mxu0 %v5400_v56  ;;  %2079 = vmatprep.subr.bf16.mxu1 %v5403_v57  ;;  %v5491_v56 = vld [vmem:[%s7757_s4 + $0x60] ss:$8 sps:$4 sm:$0xff]   ;;  %v5496_v57 = vld [vmem:[%s7757_s4 + $0x74] ss:$8 sps:$4 sm:$0xff]  }
  0xc5   : > { %1916 = vmatpush1.bf16.msra.mxu0 %v5398_v58  ;;  %2080 = vmatpush1.bf16.msra.mxu1 %v5401_v59  ;;  %v5494_v58 = vld [vmem:[%s7757_s4 + $0x70] ss:$8 sps:$4 sm:$0xff]   ;;  %v5499_v59 = vld [vmem:[%s7757_s4 + $0x84] ss:$8 sps:$4 sm:$0xff]  }
  0xc6   : > { %1917 = vmatprep.subr.bf16.mxu0 %v5406_v60  ;;  %2081 = vmatprep.subr.bf16.mxu1 %v5409_v61  ;;  %v5497_v60 = vld [vmem:[%s7757_s4 + $0x80] ss:$8 sps:$4 sm:$0xff]   ;;  %v5502_v61 = vld [vmem:[%s7757_s4 + $0x94] ss:$8 sps:$4 sm:$0xff]  }
  0xc9   : > { %1918 = vmatpush1.bf16.msra.mxu0 %v5404_v62  ;;  %2082 = vmatpush1.bf16.msra.mxu1 %v5407_v63  ;;  %v5500_v62 = vld [vmem:[%s7757_s4 + $0x90] ss:$8 sps:$4 sm:$0xff]   ;;  %v5505_v63 = vld [vmem:[%s7757_s4 + $0xa4] ss:$8 sps:$4 sm:$0xff]  }
  0xca   : > { %1919 = vmatprep.subr.bf16.mxu0 %v5412_v0  ;;  %2083 = vmatprep.subr.bf16.mxu1 %v5415_v1  ;;  %v5503_v0 = vld [vmem:[%s7757_s4 + $0xa0] ss:$8 sps:$4 sm:$0xff]   ;;  %v5508_v1 = vld [vmem:[%s7757_s4 + $0xb4] ss:$8 sps:$4 sm:$0xff]  }
  0xcd   : > { %1920 = vmatpush1.bf16.msra.mxu0 %v5410_v2  ;;  %2084 = vmatpush1.bf16.msra.mxu1 %v5413_v3  ;;  %v5506_v2 = vld [vmem:[%s7757_s4 + $0xb0] ss:$8 sps:$4 sm:$0xff]   ;;  %v5511_v3 = vld [vmem:[%s7757_s4 + $0xc4] ss:$8 sps:$4 sm:$0xff]  }
  0xce   : > { %1921 = vmatprep.subr.bf16.mxu0 %v5418_v4  ;;  %2085 = vmatprep.subr.bf16.mxu1 %v5421_v5  ;;  %v5509_v4 = vld [vmem:[%s7757_s4 + $0xc0] ss:$8 sps:$4 sm:$0xff]   ;;  %v5514_v5 = vld [vmem:[%s7757_s4 + $0xd4] ss:$8 sps:$4 sm:$0xff]  }
  0xd1   : > { %1922 = vmatpush1.bf16.msra.mxu0 %v5416_v6  ;;  %2086 = vmatpush1.bf16.msra.mxu1 %v5419_v7  ;;  %v5512_v6 = vld [vmem:[%s7757_s4 + $0xd0] ss:$8 sps:$4 sm:$0xff]   ;;  %v5517_v7 = vld [vmem:[%s7757_s4 + $0xe4] ss:$8 sps:$4 sm:$0xff]  }
  0xd2   : > { %1932 = vmatprep.subr.bf16.mxu0 %v5426_v8  ;;  %2096 = vmatprep.subr.bf16.mxu1 %v5429_v9  ;;  %v5515_v8 = vld [vmem:[%s7757_s4 + $0xe0] ss:$8 sps:$4 sm:$0xff]   ;;  %v5520_v9 = vld [vmem:[%s7757_s4 + $0xf4] ss:$8 sps:$4 sm:$0xff]  }
  0xd4   : > { %1924 = vmatmul.mubr.bf16.vlgmr.msra.gmra.mrb[0].mxu0 %v4512_v13  ;;  %2088 = vmatmul.mubr.bf16.vlgmr.msra.gmra.mrb[0].mxu1 %v4512_v13  ;;  %v5548_v13 = vld [vmem:[%s7759_s6] ss:$16 sps:$4 sm:$0xff]  }
  0xd5   : > { %1933 = vmatpush1.bf16.msra.mxu0 %v5424_v10  ;;  %2097 = vmatpush1.bf16.msra.mxu1 %v5427_v12  ;;  %v5518_v10 = vld [vmem:[%s7757_s4 + $0xf0] ss:$8 sps:$4 sm:$0xff]   ;;  %v5523_v12 = vld [vmem:[%s7757_s4 + $0x104] ss:$8 sps:$4 sm:$0xff]  }
  0xd6   : > { %1934 = vmatprep.subr.bf16.mxu0 %v5432_v14  ;;  %2098 = vmatprep.subr.bf16.mxu1 %v5435_v15  ;;  %v5550_v14 = vld [vmem:[%s7759_s6 + $0x4] ss:$16 sps:$4 sm:$0xff]  }
  0xd7   : > { %1964 = vmatprep.mubr.bf16.mxu0 %v5972_v21  ;;  %2128 = vmatprep.mubr.bf16.mxu1 %v5972_v21  ;;  %v5553_v15 = vld [vmem:[%s7759_s6 + $0x24] ss:$16 sps:$4 sm:$0xff]  }
  0xd9   : > { %1935 = vmatpush1.bf16.msra.mxu0 %v5430_v16  ;;  %2099 = vmatpush1.bf16.msra.mxu1 %v5433_v11  ;;  %v5551_v16 = vld [vmem:[%s7759_s6 + $0x20] ss:$16 sps:$4 sm:$0xff]   ;;  %v644_v11 = vlaneseq }
  0xda   : > { %1936 = vmatprep.subr.bf16.mxu0 %v5438_v17  ;;  %2100 = vmatprep.subr.bf16.mxu1 %v5441_v18 }
  0xdb   : > { %v6895_v17 = vshrl.u32 %v644_v11, 7  ;;  %v5607_v11 = vld [vmem:[%s7761_s8 + $0x44] ss:$28 sps:$4 sm:$0xff]  }
  0xdd   : > { %1937 = vmatpush1.bf16.msra.mxu0 %v5436_v19  ;;  %2101 = vmatpush1.bf16.msra.mxu1 %v5439_v20  ;;  %v6898_v18 = vsub.s32 0, %v6895_v17  ;;  %v642_v19 = vld [vmem:[%s7756_s3] sm:$0xf]  ;;  %v6904_v20 = vsub.s32 1, %v6895_v17 }
  0xde   : > { %1938 = vmatprep.subr.bf16.mxu0 %v5444_v22  ;;  %2102 = vmatprep.subr.bf16.mxu1 %v5447_v23  ;;  %v6907_v22 = vsub.s32 3, %v6895_v17 }
  0xdf   : > { %v647_v23 = vrot.slane %v642_v19, %v6898_v18 }
  0xe1   : > { %1939 = vmatpush1.bf16.msra.mxu0 %v5442_v24  ;;  %2103 = vmatpush1.bf16.msra.mxu1 %v5445_v25  ;;  %v651_v24 = vrot.slane %v642_v19, %v6904_v20  ;;  %v659_v25 = vrot.slane %v642_v19, %v6907_v22 }
  0xe2   : > { %1940 = vmatprep.subr.bf16.mxu0 %v5450_v26  ;;  %2104 = vmatprep.subr.bf16.mxu1 %v5453_v27 }
  0xe5   : > { %1941 = vmatpush1.bf16.msra.mxu0 %v5448_v28  ;;  %2105 = vmatpush1.bf16.msra.mxu1 %v5451_v29 }
  0xe6   : > { %1942 = vmatprep.subr.bf16.mxu0 %v5456_v30  ;;  %2106 = vmatprep.subr.bf16.mxu1 %v5459_v31 }
  0xe9   : > { %1943 = vmatpush1.bf16.msra.mxu0 %v5454_v32  ;;  %2107 = vmatpush1.bf16.msra.mxu1 %v5457_v33 }
  0xea   : > { %1944 = vmatprep.subr.bf16.mxu0 %v5462_v34  ;;  %2108 = vmatprep.subr.bf16.mxu1 %v5465_v35 }
  0xed   : > { %1945 = vmatpush1.bf16.msra.mxu0 %v5460_v36  ;;  %2109 = vmatpush1.bf16.msra.mxu1 %v5463_v37 }
  0xee   : > { %1946 = vmatprep.subr.bf16.mxu0 %v5468_v38  ;;  %2110 = vmatprep.subr.bf16.mxu1 %v5471_v39 }
  0xf1   : > { %1947 = vmatpush1.bf16.msra.mxu0 %v5466_v40  ;;  %2111 = vmatpush1.bf16.msra.mxu1 %v5469_v41  ;;  %v5521_v41 = vld [vmem:[%s7757_s4 + $0x100] ss:$8 sps:$4 sm:$0xff]  }
  0xf2   : > { %2461 = vmatprep.subr.bf16.mxu0 %v5475_v42  ;;  %2764 = vmatprep.subr.bf16.mxu1 %v5550_v14  ;;  %v5574_v14 = vld [vmem:[%s7759_s6 + $0xc] ss:$16 sps:$4 sm:$0xff]  }
  0xf4   : > { %1965 = vmatmul.mubr.bf16.vlgmr.msra.gmra.mrb[0].mxu0 %v5472_v43  ;;  %2129 = vmatmul.mubr.bf16.vlgmr.msra.gmra.mrb[0].mxu1 %v5472_v43  ;;  %v5526_v43 = vld [vmem:[%s7757_s4 + $0x114] ss:$8 sps:$4 sm:$0xff]  }
  0xf5   : > { %2462 = vmatpush1.bf16.msra.mxu0 %v5473_v44  ;;  %2796 = vmatprep.mubr.bf16.mxu1 %v5972_v21 }
  0xf6   : > { %2463 = vmatprep.subr.bf16.mxu0 %v5478_v45  ;;  %2765 = vmatpush1.bf16.msra.mxu1 %v5548_v13  ;;  %v5524_v45 = vld [vmem:[%s7757_s4 + $0x110] ss:$8 sps:$4 sm:$0xff]  }
  0xf7   : > { %2766 = vmatprep.subr.bf16.mxu1 %v5553_v15  ;;  %v5569_v13 = vld [vmem:[%s7759_s6 + $0xe0] ss:$16 sps:$4 sm:$0xff]   ;;  %v5599_v15 = vld [vmem:[%s7761_s8 + $0x8] ss:$28 sps:$4 sm:$0xff]  }
  0xf9   : > { %2464 = vmatpush1.bf16.msra.mxu0 %v5476_v46  ;;  %v5529_v46 = vld [vmem:[%s7757_s4 + $0x124] ss:$8 sps:$4 sm:$0xff]  }
  0xfa   : > { %2465 = vmatprep.subr.bf16.mxu0 %v5481_v47  ;;  %2767 = vmatpush1.bf16.msra.mxu1 %v5551_v16  ;;  %v5527_v47 = vld [vmem:[%s7757_s4 + $0x120] ss:$8 sps:$4 sm:$0xff]  }
  0xfb   : > { %v5601_v16 = vld [vmem:[%s7761_s8 + $0xc] ss:$28 sps:$4 sm:$0xff]  }
  0xfd   : > { %2466 = vmatpush1.bf16.msra.mxu0 %v5479_v48  ;;  %v5532_v48 = vld [vmem:[%s7757_s4 + $0x134] ss:$8 sps:$4 sm:$0xff]  }
  0xfe   : > { %2467 = vmatprep.subr.bf16.mxu0 %v5484_v49  ;;  %v5530_v49 = vld [vmem:[%s7757_s4 + $0x130] ss:$8 sps:$4 sm:$0xff]  }
 0x101   : > { %2468 = vmatpush1.bf16.msra.mxu0 %v5482_v50  ;;  %v5535_v50 = vld [vmem:[%s7757_s4 + $0x144] ss:$8 sps:$4 sm:$0xff]  }
 0x102   : > { %2469 = vmatprep.subr.bf16.mxu0 %v5487_v51  ;;  %v5533_v51 = vld [vmem:[%s7757_s4 + $0x140] ss:$8 sps:$4 sm:$0xff]  }
 0x105   : > { %2470 = vmatpush1.bf16.msra.mxu0 %v5485_v52  ;;  %v5538_v52 = vld [vmem:[%s7757_s4 + $0x154] ss:$8 sps:$4 sm:$0xff]  }
 0x106   : > { %2471 = vmatprep.subr.bf16.mxu0 %v5490_v53  ;;  %v5536_v53 = vld [vmem:[%s7757_s4 + $0x150] ss:$8 sps:$4 sm:$0xff]  }
 0x109   : > { %2472 = vmatpush1.bf16.msra.mxu0 %v5488_v54  ;;  %v6947_v54 = vsub.s32 2, %v6895_v17 }
 0x10a   : > { %2473 = vmatprep.subr.bf16.mxu0 %v5493_v55  ;;  %v5541_v55 = vld [vmem:[%s7757_s4 + $0x164] ss:$8 sps:$4 sm:$0xff]  }
 0x10d   : > { %2474 = vmatpush1.bf16.msra.mxu0 %v5491_v56  ;;  %v5539_v56 = vld [vmem:[%s7757_s4 + $0x160] ss:$8 sps:$4 sm:$0xff]  }
 0x10e   : > { %2475 = vmatprep.subr.bf16.mxu0 %v5496_v57  ;;  %v655_v57 = vrot.slane %v642_v19, %v6947_v54  ;;  %v5605_v19 = vld [vmem:[%s7761_s8 + $0x40] ss:$28 sps:$4 sm:$0xff]  }
 0x111   : > { %2476 = vmatpush1.bf16.msra.mxu0 %v5494_v58  ;;  %v5544_v58 = vld [vmem:[%s7757_s4 + $0x174] ss:$8 sps:$4 sm:$0xff]  }
 0x112   : > { %2477 = vmatprep.subr.bf16.mxu0 %v5499_v59  ;;  %v5542_v59 = vld [vmem:[%s7757_s4 + $0x170] ss:$8 sps:$4 sm:$0xff]  }
 0x115   : > { %2478 = vmatpush1.bf16.msra.mxu0 %v5497_v60 }
 0x116   : > { %2479 = vmatprep.subr.bf16.mxu0 %v5502_v61  ;;  %v5547_v61 = vld [vmem:[%s7757_s4 + $0x184] ss:$8 sps:$4 sm:$0xff]  }
 0x119   : > { %2480 = vmatpush1.bf16.msra.mxu0 %v5500_v62  ;;  %v5545_v62 = vld [vmem:[%s7757_s4 + $0x180] ss:$8 sps:$4 sm:$0xff]  }
 0x11a   : > { %2481 = vmatprep.subr.bf16.mxu0 %v5505_v63 }
 0x11d   : > { %2482 = vmatpush1.bf16.msra.mxu0 %v5503_v0 }
 0x11e   : > { %2483 = vmatprep.subr.bf16.mxu0 %v5508_v1  ;;  %v5556_v1 = vld [vmem:[%s7759_s6 + $0x44] ss:$16 sps:$4 sm:$0xff]  }
 0x11f   : > { %2768 = vmatprep.subr.bf16.mxu1 %v5556_v1  ;;  %v5577_v1 = vld [vmem:[%s7759_s6 + $0x2c] ss:$16 sps:$4 sm:$0xff]  }
 0x121   : > { %2484 = vmatpush1.bf16.msra.mxu0 %v5506_v2  ;;  %v5554_v2 = vld [vmem:[%s7759_s6 + $0x40] ss:$16 sps:$4 sm:$0xff]  }
 0x122   : > { %2485 = vmatprep.subr.bf16.mxu0 %v5511_v3  ;;  %2769 = vmatpush1.bf16.msra.mxu1 %v5554_v2  ;;  %v5559_v3 = vld [vmem:[%s7759_s6 + $0x64] ss:$16 sps:$4 sm:$0xff]   ;;  %v5575_v2 = vld [vmem:[%s7759_s6 + $0x28] ss:$16 sps:$4 sm:$0xff]  }
 0x123   : > { %2770 = vmatprep.subr.bf16.mxu1 %v5559_v3  ;;  %v5580_v3 = vld [vmem:[%s7759_s6 + $0x4c] ss:$16 sps:$4 sm:$0xff]  }
 0x125   : > { %2486 = vmatpush1.bf16.msra.mxu0 %v5509_v4  ;;  %v5557_v4 = vld [vmem:[%s7759_s6 + $0x60] ss:$16 sps:$4 sm:$0xff]  }
 0x126   : > { %2487 = vmatprep.subr.bf16.mxu0 %v5514_v5  ;;  %2771 = vmatpush1.bf16.msra.mxu1 %v5557_v4  ;;  %v5562_v5 = vld [vmem:[%s7759_s6 + $0x84] ss:$16 sps:$4 sm:$0xff]   ;;  %v5578_v4 = vld [vmem:[%s7759_s6 + $0x48] ss:$16 sps:$4 sm:$0xff]  }
 0x127   : > { %2772 = vmatprep.subr.bf16.mxu1 %v5562_v5  ;;  %v5583_v5 = vld [vmem:[%s7759_s6 + $0x6c] ss:$16 sps:$4 sm:$0xff]  }
 0x129   : > { %2488 = vmatpush1.bf16.msra.mxu0 %v5512_v6  ;;  %v5560_v6 = vld [vmem:[%s7759_s6 + $0x80] ss:$16 sps:$4 sm:$0xff]  }
 0x12a   : > { %2489 = vmatprep.subr.bf16.mxu0 %v5517_v7  ;;  %v5565_v7 = vld [vmem:[%s7759_s6 + $0xa4] ss:$16 sps:$4 sm:$0xff]   ;;  %2773 = vmatpush1.bf16.msra.mxu1 %v5560_v6  ;;  %v5581_v6 = vld [vmem:[%s7759_s6 + $0x68] ss:$16 sps:$4 sm:$0xff]  }
 0x12b   : > { %2774 = vmatprep.subr.bf16.mxu1 %v5565_v7  ;;  %v5586_v7 = vld [vmem:[%s7759_s6 + $0x8c] ss:$16 sps:$4 sm:$0xff]  }
 0x12d   : > { %2490 = vmatpush1.bf16.msra.mxu0 %v5515_v8  ;;  %v5563_v8 = vld [vmem:[%s7759_s6 + $0xa0] ss:$16 sps:$4 sm:$0xff]  }
 0x12e   : > { %2491 = vmatprep.subr.bf16.mxu0 %v5520_v9  ;;  %v5568_v9 = vld [vmem:[%s7759_s6 + $0xc4] ss:$16 sps:$4 sm:$0xff]   ;;  %2775 = vmatpush1.bf16.msra.mxu1 %v5563_v8  ;;  %v5584_v8 = vld [vmem:[%s7759_s6 + $0x88] ss:$16 sps:$4 sm:$0xff]  }
 0x12f   : > { %2776 = vmatprep.subr.bf16.mxu1 %v5568_v9  ;;  %v5589_v9 = vld [vmem:[%s7759_s6 + $0xac] ss:$16 sps:$4 sm:$0xff]  }
 0x131   : > { %2492 = vmatpush1.bf16.msra.mxu0 %v5518_v10  ;;  %v5566_v10 = vld [vmem:[%s7759_s6 + $0xc0] ss:$16 sps:$4 sm:$0xff]  }
 0x132   : > { %2502 = vmatprep.subr.bf16.mxu0 %v5523_v12  ;;  %v5571_v12 = vld [vmem:[%s7759_s6 + $0xe4] ss:$16 sps:$4 sm:$0xff]   ;;  %2777 = vmatpush1.bf16.msra.mxu1 %v5566_v10  ;;  %v5587_v10 = vld [vmem:[%s7759_s6 + $0xa8] ss:$16 sps:$4 sm:$0xff]  }
 0x133   : > { %2778 = vmatprep.subr.bf16.mxu1 %v5571_v12  ;;  %v5592_v12 = vld [vmem:[%s7759_s6 + $0xcc] ss:$16 sps:$4 sm:$0xff]  }
 0x136   : > { %2779 = vmatpush1.bf16.msra.mxu1 %v5569_v13  ;;  %v5590_v13 = vld [vmem:[%s7759_s6 + $0xc8] ss:$16 sps:$4 sm:$0xff]  }
 0x137   : > { %2805 = vmatprep.subr.bf16.mxu1 %v5574_v14  ;;  %v5595_v14 = vld [vmem:[%s7759_s6 + $0xec] ss:$16 sps:$4 sm:$0xff]  }
 0x1c7   : > { %v1966_v26 = vpop.f32.mrb[0].mxu0  ;;  %v2130_v27 = vpop.f32.mrb[0].mxu1 }
 0x1c8   : > { %v5030_v28 = vadd.f32 %v1966_v26, %v647_v23  ;;  %v1968_v29 = vpop.f32.mrb[1].mxu0  ;;  %v2132_v30 = vpop.f32.mrb[1].mxu1  ;;  %v5032_v60 = vadd.f32 %v2130_v27, %v655_v57  ;;  %v5613_v23 = vld [vmem:[%s7761_s8 + $0x7c] ss:$28 sps:$4 sm:$0xff]   ;;  %v5617_v26 = vld [vmem:[%s7761_s8 + $0xb0] ss:$28 sps:$4 sm:$0xff]  }
 0x1c9   : > { %v5031_v31 = vadd.f32 %v1968_v29, %v651_v24  ;;  %v5033_v32 = vadd.f32 %v2132_v30, %v659_v25  ;;  %v1970_v33 = vpop.f32.mrb[2].mxu0  ;;  %v2134_v34 = vpop.f32.mrb[2].mxu1  ;;  %v5611_v24 = vld [vmem:[%s7761_s8 + $0x78] ss:$28 sps:$4 sm:$0xff]   ;;  %v5625_v27 = vld [vmem:[%s7761_s8 + $0xec] ss:$28 sps:$4 sm:$0xff]  }
 0x1ca   : > { %v2137_v35 = vmax.f32 %v5030_v28, 0.0  ;;  %v1971_v36 = vpop.f32.mrb[3].mxu0  ;;  %v2135_v37 = vpop.f32.mrb[3].mxu1  ;;  %v2139_v63 = vmax.f32 %v5032_v60, 0.0  ;;  %v5619_v25 = vld [vmem:[%s7761_s8 + $0xb4] ss:$28 sps:$4 sm:$0xff]  }
 0x1cb   : > { %v2138_v38 = vmax.f32 %v5031_v31, 0.0  ;;  %v2140_v39 = vmax.f32 %v5033_v32, 0.0  ;;  %v5623_v28 = vld [vmem:[%s7761_s8 + $0xe8] ss:$28 sps:$4 sm:$0xff]   ;;  %v5629_v30 = vld [vmem:[%s7761_s8 + $0x120] ss:$28 sps:$4 sm:$0xff]  }
 0x1cc   : > { %v2141_v42 = vpack.c.bf16 %v2137_v35, %v2137_v35  ;;  %v2143_v0 = vpack.c.bf16 %v2139_v63, %v2139_v63  ;;  %v5631_v29 = vld [vmem:[%s7761_s8 + $0x124] ss:$28 sps:$4 sm:$0xff]   ;;  %v5637_v31 = vld [vmem:[%s7761_s8 + $0x15c] ss:$28 sps:$4 sm:$0xff]   ;;  %v5643_v33 = vld [vmem:[%s7761_s8 + $0x194] ss:$28 sps:$4 sm:$0xff]  }
 0x1cd   : > { %v2142_v40 = vpack.c.bf16 %v2138_v38, %v2138_v38  ;;  %v2144_v44 = vpack.c.bf16 %v2140_v39, %v2140_v39  ;;  %v5635_v32 = vld [vmem:[%s7761_s8 + $0x158] ss:$28 sps:$4 sm:$0xff]   ;;  %v5641_v34 = vld [vmem:[%s7761_s8 + $0x190] ss:$28 sps:$4 sm:$0xff]   ;;  %v5647_v36 = vld [vmem:[%s7761_s8 + $0x1c8] ss:$28 sps:$4 sm:$0xff]  }
 0x1ce   : > { %v5649_v35 = vld [vmem:[%s7761_s8 + $0x1cc] ss:$28 sps:$4 sm:$0xff]   ;;  %v5655_v37 = vld [vmem:[%s7761_s8 + $0x204] ss:$28 sps:$4 sm:$0xff]   ;;  %v5661_v39 = vld [vmem:[%s7761_s8 + $0x23c] ss:$28 sps:$4 sm:$0xff]  }
 0x1cf   : > { %2493 = vmatprep.mubr.bf16.mxu0 %v2142_v40  ;;  %v5653_v38 = vld [vmem:[%s7761_s8 + $0x200] ss:$28 sps:$4 sm:$0xff]   ;;  %v5659_v40 = vld [vmem:[%s7761_s8 + $0x238] ss:$28 sps:$4 sm:$0xff]  }
 0x1d0   : > { %2494 = vmatmul.mubr.bf16.vlgmr.msra.gmra.mrb[4].mxu0 %v2141_v42  ;;  %v5665_v42 = vld [vmem:[%s7761_s8 + $0x270] ss:$28 sps:$4 sm:$0xff]   ;;  %v5572_v63 = vld [vmem:[%s7759_s6 + $0x8] ss:$16 sps:$4 sm:$0xff]  }
 0x1d1   : > { %2503 = vmatpush1.bf16.msra.mxu0 %v5521_v41  ;;  %4789 = vmatprep.mubr.msk.bf16.mxu0 %vm2457_vm0, %v2144_v44  ;;  %v5667_v41 = vld [vmem:[%s7761_s8 + $0x274] ss:$28 sps:$4 sm:$0xff]   ;;  %v5671_v44 = vld [vmem:[%s7761_s8 + $0x2a8] ss:$28 sps:$4 sm:$0xff]  }
 0x1d2   : > { %2504 = vmatprep.subr.bf16.mxu0 %v5526_v43  ;;  %v5673_v43 = vld [vmem:[%s7761_s8 + $0x2ac] ss:$28 sps:$4 sm:$0xff]  }
 0x1d5   : > { %2505 = vmatpush1.bf16.msra.mxu0 %v5524_v45  ;;  %v5679_v45 = vld [vmem:[%s7761_s8 + $0x2e4] ss:$28 sps:$4 sm:$0xff]  }
 0x1d6   : > { %2506 = vmatprep.subr.bf16.mxu0 %v5529_v46  ;;  %v5677_v46 = vld [vmem:[%s7761_s8 + $0x2e0] ss:$28 sps:$4 sm:$0xff]  }
 0x1d9   : > { %2507 = vmatpush1.bf16.msra.mxu0 %v5527_v47  ;;  %v2195_v47 = vld [vmem:[%s7758_s5] sm:$0x3] }
 0x1da   : > { %2508 = vmatprep.subr.bf16.mxu0 %v5532_v48  ;;  %v2200_v48 = vrot.slane %v2195_v47, %v6898_v18 }
 0x1dd   : > { %2509 = vmatpush1.bf16.msra.mxu0 %v5530_v49  ;;  %v2204_v49 = vrot.slane %v2195_v47, %v6904_v20  ;;  %v5674_v47 = vld [vmem:[%s7761_s8 + $0x2d8] ss:$28 sps:$4 sm:$0xff]  }
 0x1de   : > { %2510 = vmatprep.subr.bf16.mxu0 %v5535_v50 }
 0x1e1   : > { %2511 = vmatpush1.bf16.msra.mxu0 %v5533_v51 }
 0x1e2   : > { %2512 = vmatprep.subr.bf16.mxu0 %v5538_v52 }
 0x1e5   : > { %2513 = vmatpush1.bf16.msra.mxu0 %v5536_v53 }
 0x1e6   : > { %2514 = vmatprep.subr.bf16.mxu0 %v5541_v55 }
 0x1e9   : > { %2515 = vmatpush1.bf16.msra.mxu0 %v5539_v56 }
 0x1ea   : > { %2516 = vmatprep.subr.bf16.mxu0 %v5544_v58 }
 0x1ed   : > { %2517 = vmatpush1.bf16.msra.mxu0 %v5542_v59  ;;  %v2546_v59 = vld [vmem:[%s412_s19] sm:$0xff]  ;;  %s5973_s19 = smov [#allocation4]  }
 0x1ee   : > { %2518 = vmatprep.subr.bf16.mxu0 %v5547_v61  ;;  %s5880_s16 = sshll.u32 %s5973_s19, 4  ;;  %s5881_s16 = int_to_ptr.vmem [resolvable:$false] %s5880_s16 }
 0x1ef   : > { %s5882_s25 = scalar_lea.vmem %s5881_s16, 512  ;;  %p5883_p0 = scmp.lt.s32.totalorder %s7665_s13, %s5881_s16 }
 0x1f0   : > { %p5884_p1 = scmp.lt.s32.totalorder %s5882_s25, %s5876_s15 }
 0x1f1   : > { %2519 = vmatpush1.bf16.msra.mxu0 %v5545_v62 }
 0x1f2   : > { %4076 = vmatprep.subr.bf16.mxu0 %v5601_v16  ;;  %v5598_v16 = vld [vmem:[%s7761_s8 + $0x4] ss:$28 sps:$4 sm:$0xff]   ;;  %p5885_p2 = por %p5884_p1, %p5883_p0 }
 0x1f4   : > { %2535 = vmatmul.mubr.bf16.vlgmr.msra.gmra.mrb[4].mxu0 %v2143_v0  ;;  %p5886_p3 = pnand %p5885_p2, %p5879_p13 }
 0x1f5   : > { %4077 = vmatpush1.bf16.msra.mxu0 %v5599_v15  ;;  %v5593_v15 = vld [vmem:[%s7759_s6 + $0xe8] ss:$16 sps:$4 sm:$0xff]  }
 0x1f6   : > { %4078 = vmatprep.subr.bf16.mxu0 %v5607_v11  ;;  %v5596_v11 = vld [vmem:[%s7761_s8] ss:$28 sps:$4 sm:$0xff]  }
 0x1f9   : > { %4079 = vmatpush1.bf16.msra.mxu0 %v5605_v19  ;;  %v5604_v19 = vld [vmem:[%s7761_s8 + $0x3c] ss:$28 sps:$4 sm:$0xff]  }
 0x1fa   : > { %4080 = vmatprep.subr.bf16.mxu0 %v5613_v23  ;;  %v5602_v23 = vld [vmem:[%s7761_s8 + $0x38] ss:$28 sps:$4 sm:$0xff]  }
 0x1fd   : > { %4081 = vmatpush1.bf16.msra.mxu0 %v5611_v24  ;;  %v5610_v24 = vld [vmem:[%s7761_s8 + $0x74] ss:$28 sps:$4 sm:$0xff]  }
 0x1fe   : > { %4082 = vmatprep.subr.bf16.mxu0 %v5619_v25  ;;  %v5608_v25 = vld [vmem:[%s7761_s8 + $0x70] ss:$28 sps:$4 sm:$0xff]  }
 0x201   : > { %4083 = vmatpush1.bf16.msra.mxu0 %v5617_v26  ;;  %v5616_v26 = vld [vmem:[%s7761_s8 + $0xac] ss:$28 sps:$4 sm:$0xff]  }
 0x202   : > { %4084 = vmatprep.subr.bf16.mxu0 %v5625_v27  ;;  %v5614_v27 = vld [vmem:[%s7761_s8 + $0xa8] ss:$28 sps:$4 sm:$0xff]  }
 0x205   : > { %4085 = vmatpush1.bf16.msra.mxu0 %v5623_v28  ;;  %v5622_v28 = vld [vmem:[%s7761_s8 + $0xe4] ss:$28 sps:$4 sm:$0xff]  }
 0x206   : > { %4086 = vmatprep.subr.bf16.mxu0 %v5631_v29  ;;  %v5620_v29 = vld [vmem:[%s7761_s8 + $0xe0] ss:$28 sps:$4 sm:$0xff]  }
 0x209   : > { %4087 = vmatpush1.bf16.msra.mxu0 %v5629_v30  ;;  %v5628_v30 = vld [vmem:[%s7761_s8 + $0x11c] ss:$28 sps:$4 sm:$0xff]  }
 0x20a   : > { %4088 = vmatprep.subr.bf16.mxu0 %v5637_v31  ;;  %v5626_v31 = vld [vmem:[%s7761_s8 + $0x118] ss:$28 sps:$4 sm:$0xff]  }
 0x20d   : > { %4089 = vmatpush1.bf16.msra.mxu0 %v5635_v32  ;;  %v5634_v32 = vld [vmem:[%s7761_s8 + $0x154] ss:$28 sps:$4 sm:$0xff]  }
 0x20e   : > { %4090 = vmatprep.subr.bf16.mxu0 %v5643_v33  ;;  %v5632_v33 = vld [vmem:[%s7761_s8 + $0x150] ss:$28 sps:$4 sm:$0xff]  }
 0x211   : > { %4091 = vmatpush1.bf16.msra.mxu0 %v5641_v34  ;;  %v5640_v34 = vld [vmem:[%s7761_s8 + $0x18c] ss:$28 sps:$4 sm:$0xff]  }
 0x212   : > { %4092 = vmatprep.subr.bf16.mxu0 %v5649_v35  ;;  %v5638_v35 = vld [vmem:[%s7761_s8 + $0x188] ss:$28 sps:$4 sm:$0xff]  }
 0x215   : > { %4093 = vmatpush1.bf16.msra.mxu0 %v5647_v36  ;;  %v5646_v36 = vld [vmem:[%s7761_s8 + $0x1c4] ss:$28 sps:$4 sm:$0xff]  }
 0x216   : > { %4094 = vmatprep.subr.bf16.mxu0 %v5655_v37  ;;  %v5644_v37 = vld [vmem:[%s7761_s8 + $0x1c0] ss:$28 sps:$4 sm:$0xff]  }
 0x219   : > { %4095 = vmatpush1.bf16.msra.mxu0 %v5653_v38  ;;  %v5652_v38 = vld [vmem:[%s7761_s8 + $0x1fc] ss:$28 sps:$4 sm:$0xff]  }
 0x21a   : > { %4096 = vmatprep.subr.bf16.mxu0 %v5661_v39  ;;  %v5650_v39 = vld [vmem:[%s7761_s8 + $0x1f8] ss:$28 sps:$4 sm:$0xff]  }
 0x21d   : > { %4097 = vmatpush1.bf16.msra.mxu0 %v5659_v40  ;;  %v5658_v40 = vld [vmem:[%s7761_s8 + $0x234] ss:$28 sps:$4 sm:$0xff]  }
 0x21e   : > { %4098 = vmatprep.subr.bf16.mxu0 %v5667_v41  ;;  %v5656_v41 = vld [vmem:[%s7761_s8 + $0x230] ss:$28 sps:$4 sm:$0xff]  }
 0x221   : > { %4099 = vmatpush1.bf16.msra.mxu0 %v5665_v42  ;;  %v5664_v42 = vld [vmem:[%s7761_s8 + $0x26c] ss:$28 sps:$4 sm:$0xff]  }
 0x222   : > { %4100 = vmatprep.subr.bf16.mxu0 %v5673_v43  ;;  %v5662_v43 = vld [vmem:[%s7761_s8 + $0x268] ss:$28 sps:$4 sm:$0xff]  }
 0x225   : > { %4101 = vmatpush1.bf16.msra.mxu0 %v5671_v44  ;;  %v5670_v44 = vld [vmem:[%s7761_s8 + $0x2a4] ss:$28 sps:$4 sm:$0xff]  }
 0x226   : > { %4102 = vmatprep.subr.bf16.mxu0 %v5679_v45  ;;  %v5668_v45 = vld [vmem:[%s7761_s8 + $0x2a0] ss:$28 sps:$4 sm:$0xff]  }
 0x229   : > { %4103 = vmatpush1.bf16.msra.mxu0 %v5677_v46  ;;  %v5676_v46 = vld [vmem:[%s7761_s8 + $0x2dc] ss:$28 sps:$4 sm:$0xff]  }
 0x2c7   : > { %v2536_v50 = vpop.f32.mrb[4].mxu0 }
 0x2c8   : > { %v5034_v51 = vadd.f32 %v2536_v50, %v2200_v48  ;;  %v2538_v52 = vpop.f32.mrb[5].mxu0  ;;  %v5682_v48 = vld [vmem:[%s7761_s8 + $0x314] ss:$28 sps:$4 sm:$0xff]  }
 0x2c9   : > { %v5035_v53 = vadd.f32 %v2538_v52, %v2204_v49  ;;  %v2540_v55 = vpop.f32.mrb[6].mxu0  ;;  %v5685_v49 = vld [vmem:[%s7761_s8 + $0x31c] ss:$28 sps:$4 sm:$0xff]   ;;  %v5688_v52 = vld [vmem:[%s7761_s8 + $0x34c] ss:$28 sps:$4 sm:$0xff]  }
 0x2ca   : > { %4362 = vst [vmem:[%s7100_s26] sm:$0xff] %v5034_v51  ;;  %v2541_v56 = vpop.f32.mrb[7].mxu0  ;;  %v5683_v50 = vld [vmem:[%s7761_s8 + $0x318] ss:$28 sps:$4 sm:$0xff]   ;;  %4104 = vmatprep.subr.bf16.mxu0 %v5685_v49  ;;  %v5689_v55 = vld [vmem:[%s7761_s8 + $0x350] ss:$28 sps:$4 sm:$0xff]  }
 0x2cb   : > { %v2543_v57 = vmul.f32 0.5, %v5035_v53  ;;  %4363 = vst [vmem:[%s7100_s26 + $0x8] sm:$0xff] %v5035_v53  ;;  %4105 = vmatpush1.bf16.msra.mxu0 %v5683_v50  ;;  %v5691_v53 = vld [vmem:[%s7761_s8 + $0x354] ss:$28 sps:$4 sm:$0xff]   ;;  %v5686_v56 = vld [vmem:[%s7761_s8 + $0x348] ss:$28 sps:$4 sm:$0xff]  }
 0x2cc   : > { %4106 = vmatprep.subr.bf16.mxu0 %v5691_v53 }
 0x2cd   : > { %v2544_v58 = vmul.f32 1.442695, %v2543_v57  ;;  %v5694_v57 = vld [vmem:[%s7761_s8 + $0x384] ss:$28 sps:$4 sm:$0xff]  }
 0x2cf   : > { %5846 = vpow2.f32 %v2544_v58  ;;  %4107 = vmatpush1.bf16.msra.mxu0 %v5689_v55  ;;  %v5697_v58 = vld [vmem:[%s7761_s8 + $0x38c] ss:$28 sps:$4 sm:$0xff]  }
 0x2d0   : > { %4117 = vmatprep.subr.bf16.mxu0 %v5697_v58 }
 0x2d9   : > { %v5847_v60 = vpop.eup %5846 }
 0x2da   : > { %v2547_v61 = vmul.f32 %v5847_v60, %v2546_v59  ;;  %v7271_v59 = vld [vmem:[%s7760_s7] sm:$0xf] }
 0x2db   : > { %v2587_v60 = vrot.slane %v7271_v59, %v6898_v18 }
 0x2dc   : > { %v2548_v62 = vadd.f32 %v5034_v51, %v2547_v61  ;;  %v5680_v51 = vld [vmem:[%s7761_s8 + $0x310] ss:$28 sps:$4 sm:$0xff]   ;;  %v2591_v61 = vrot.slane %v7271_v59, %v6904_v20 }
 0x2de   : > { %v2549_v0 = vpack.c.bf16 %v2548_v62, %v2548_v62 }
 0x2e0   : > { %2797 = vmatmul.mubr.bf16.vlgmr.msra.gmra.mrb[4].mxu1 %v2549_v0 }
 0x2e1   : > { %2806 = vmatpush1.bf16.msra.mxu1 %v5572_v63  ;;  %2837 = vmatprep.mubr.bf16.mxu1 %v5972_v21 }
 0x2e2   : > { %2807 = vmatprep.subr.bf16.mxu1 %v5577_v1 }
 0x2e5   : > { %2808 = vmatpush1.bf16.msra.mxu1 %v5575_v2 }
 0x2e6   : > { %2809 = vmatprep.subr.bf16.mxu1 %v5580_v3 }
 0x2e9   : > { %2810 = vmatpush1.bf16.msra.mxu1 %v5578_v4 }
 0x2ea   : > { %2811 = vmatprep.subr.bf16.mxu1 %v5583_v5 }
 0x2ed   : > { %2812 = vmatpush1.bf16.msra.mxu1 %v5581_v6 }
 0x2ee   : > { %2813 = vmatprep.subr.bf16.mxu1 %v5586_v7  ;;  %v5692_v7 = vld [vmem:[%s7761_s8 + $0x380] ss:$28 sps:$4 sm:$0xff]  }
 0x2f1   : > { %2814 = vmatpush1.bf16.msra.mxu1 %v5584_v8  ;;  %v5695_v8 = vld [vmem:[%s7761_s8 + $0x388] ss:$28 sps:$4 sm:$0xff]  }
 0x2f2   : > { %2815 = vmatprep.subr.bf16.mxu1 %v5589_v9 }
 0x2f5   : > { %2816 = vmatpush1.bf16.msra.mxu1 %v5587_v10  ;;  %v5700_v10 = vld [vmem:[%s7761_s8 + $0x3bc] ss:$28 sps:$4 sm:$0xff]  }
 0x2f6   : > { %2817 = vmatprep.subr.bf16.mxu1 %v5592_v12  ;;  %v5703_v12 = vld [vmem:[%s7761_s8 + $0x3c4] ss:$28 sps:$4 sm:$0xff]  }
 0x2f9   : > { %2818 = vmatpush1.bf16.msra.mxu1 %v5590_v13  ;;  %v5698_v13 = vld [vmem:[%s7761_s8 + $0x3b8] ss:$28 sps:$4 sm:$0xff]  }
 0x2fa   : > { %2819 = vmatprep.subr.bf16.mxu1 %v5595_v14  ;;  %v5701_v14 = vld [vmem:[%s7761_s8 + $0x3c0] ss:$28 sps:$4 sm:$0xff]  }
 0x2fd   : > { %2820 = vmatpush1.bf16.msra.mxu1 %v5593_v15  ;;  %v5706_v15 = vld [vmem:[%s7761_s8 + $0x3f4] ss:$28 sps:$4 sm:$0xff]  }
 0x2fe   : > { %3994 = vmatprep.subr.bf16.mxu1 %v5598_v16  ;;  %v5709_v16 = vld [vmem:[%s7761_s8 + $0x3fc] ss:$28 sps:$4 sm:$0xff]  }
 0x300   : > { %2838 = vmatmul.mubr.bf16.vlgmr.msra.gmra.mrb[8].mxu1 %v2549_v0 }
 0x301   : > { %3995 = vmatpush1.bf16.msra.mxu1 %v5596_v11  ;;  %v5704_v11 = vld [vmem:[%s7761_s8 + $0x3f0] ss:$28 sps:$4 sm:$0xff]  }
 0x302   : > { %3996 = vmatprep.subr.bf16.mxu1 %v5604_v19  ;;  %v5707_v19 = vld [vmem:[%s7761_s8 + $0x3f8] ss:$28 sps:$4 sm:$0xff]  }
 0x305   : > { %3997 = vmatpush1.bf16.msra.mxu1 %v5602_v23  ;;  %v5712_v23 = vld [vmem:[%s7761_s8 + $0x42c] ss:$28 sps:$4 sm:$0xff]  }
 0x306   : > { %3998 = vmatprep.subr.bf16.mxu1 %v5610_v24  ;;  %v5715_v24 = vld [vmem:[%s7761_s8 + $0x434] ss:$28 sps:$4 sm:$0xff]  }
 0x309   : > { %3999 = vmatpush1.bf16.msra.mxu1 %v5608_v25  ;;  %v5710_v25 = vld [vmem:[%s7761_s8 + $0x428] ss:$28 sps:$4 sm:$0xff]  }
 0x30a   : > { %4000 = vmatprep.subr.bf16.mxu1 %v5616_v26  ;;  %v5713_v26 = vld [vmem:[%s7761_s8 + $0x430] ss:$28 sps:$4 sm:$0xff]  }
 0x30d   : > { %4001 = vmatpush1.bf16.msra.mxu1 %v5614_v27  ;;  %v5718_v27 = vld [vmem:[%s7761_s8 + $0x464] ss:$28 sps:$4 sm:$0xff]  }
 0x30e   : > { %4002 = vmatprep.subr.bf16.mxu1 %v5622_v28  ;;  %v5721_v28 = vld [vmem:[%s7761_s8 + $0x46c] ss:$28 sps:$4 sm:$0xff]  }
 0x311   : > { %4003 = vmatpush1.bf16.msra.mxu1 %v5620_v29  ;;  %v5716_v29 = vld [vmem:[%s7761_s8 + $0x460] ss:$28 sps:$4 sm:$0xff]  }
 0x312   : > { %4004 = vmatprep.subr.bf16.mxu1 %v5628_v30  ;;  %v5719_v30 = vld [vmem:[%s7761_s8 + $0x468] ss:$28 sps:$4 sm:$0xff]  }
 0x315   : > { %4005 = vmatpush1.bf16.msra.mxu1 %v5626_v31  ;;  %v5724_v31 = vld [vmem:[%s7761_s8 + $0x49c] ss:$28 sps:$4 sm:$0xff]  }
 0x316   : > { %4006 = vmatprep.subr.bf16.mxu1 %v5634_v32  ;;  %v5727_v32 = vld [vmem:[%s7761_s8 + $0x4a4] ss:$28 sps:$4 sm:$0xff]  }
 0x319   : > { %4007 = vmatpush1.bf16.msra.mxu1 %v5632_v33  ;;  %v5722_v33 = vld [vmem:[%s7761_s8 + $0x498] ss:$28 sps:$4 sm:$0xff]  }
 0x31a   : > { %4008 = vmatprep.subr.bf16.mxu1 %v5640_v34  ;;  %v5725_v34 = vld [vmem:[%s7761_s8 + $0x4a0] ss:$28 sps:$4 sm:$0xff]  }
 0x31d   : > { %4009 = vmatpush1.bf16.msra.mxu1 %v5638_v35  ;;  %v5730_v35 = vld [vmem:[%s7761_s8 + $0x4d4] ss:$28 sps:$4 sm:$0xff]  }
 0x31e   : > { %4010 = vmatprep.subr.bf16.mxu1 %v5646_v36  ;;  %v5733_v36 = vld [vmem:[%s7761_s8 + $0x4dc] ss:$28 sps:$4 sm:$0xff]  }
 0x321   : > { %4011 = vmatpush1.bf16.msra.mxu1 %v5644_v37  ;;  %v2599_v37 = vrot.slane %v7271_v59, %v6907_v22 }
 0x322   : > { %4012 = vmatprep.subr.bf16.mxu1 %v5652_v38  ;;  %v5728_v38 = vld [vmem:[%s7761_s8 + $0x4d0] ss:$28 sps:$4 sm:$0xff]  }
 0x325   : > { %4013 = vmatpush1.bf16.msra.mxu1 %v5650_v39  ;;  %v5731_v39 = vld [vmem:[%s7761_s8 + $0x4d8] ss:$28 sps:$4 sm:$0xff]  }
 0x326   : > { %4014 = vmatprep.subr.bf16.mxu1 %v5658_v40  ;;  %v2595_v40 = vrot.slane %v7271_v59, %v6947_v54  ;;  %v5748_v59 = vld [vmem:[%s7761_s8 + $0x14] ss:$28 sps:$4 sm:$0xff]  }
 0x329   : > { %4015 = vmatpush1.bf16.msra.mxu1 %v5656_v41  ;;  %v5736_v41 = vld [vmem:[%s7761_s8 + $0x50c] ss:$28 sps:$4 sm:$0xff]  }
 0x32a   : > { %4016 = vmatprep.subr.bf16.mxu1 %v5664_v42  ;;  %v5739_v42 = vld [vmem:[%s7761_s8 + $0x514] ss:$28 sps:$4 sm:$0xff]  }
 0x32d   : > { %4017 = vmatpush1.bf16.msra.mxu1 %v5662_v43 }
 0x32e   : > { %4018 = vmatprep.subr.bf16.mxu1 %v5670_v44 }
 0x331   : > { %4019 = vmatpush1.bf16.msra.mxu1 %v5668_v45 }
 0x332   : > { %4020 = vmatprep.subr.bf16.mxu1 %v5676_v46 }
 0x335   : > { %4021 = vmatpush1.bf16.msra.mxu1 %v5674_v47  ;;  %v5734_v47 = vld [vmem:[%s7761_s8 + $0x508] ss:$28 sps:$4 sm:$0xff]  }
 0x336   : > { %4022 = vmatprep.subr.bf16.mxu1 %v5682_v48  ;;  %v5737_v48 = vld [vmem:[%s7761_s8 + $0x510] ss:$28 sps:$4 sm:$0xff]  }
 0x339   : > { %4023 = vmatpush1.bf16.msra.mxu1 %v5680_v51  ;;  %v5742_v51 = vld [vmem:[%s7761_s8 + $0x544] ss:$28 sps:$4 sm:$0xff]  }
 0x33a   : > { %4024 = vmatprep.subr.bf16.mxu1 %v5688_v52  ;;  %v5745_v52 = vld [vmem:[%s7761_s8 + $0x54c] ss:$28 sps:$4 sm:$0xff]  }
 0x33d   : > { %4025 = vmatpush1.bf16.msra.mxu1 %v5686_v56  ;;  %v5740_v56 = vld [vmem:[%s7761_s8 + $0x540] ss:$28 sps:$4 sm:$0xff]  }
 0x33e   : > { %4035 = vmatprep.subr.bf16.mxu1 %v5694_v57  ;;  %v5743_v57 = vld [vmem:[%s7761_s8 + $0x548] ss:$28 sps:$4 sm:$0xff]  }
 0x3b3   : > { %v2798_v62 = vpop.f32.mrb[4].mxu1 }
 0x3b4   : > { %v2799_v63 = vadd.f32 %v2798_v62, %v2587_v60  ;;  %v2800_v0 = vpop.f32.mrb[5].mxu1  ;;  %v5749_v60 = vld [vmem:[%s7761_s8 + $0x1d8] ss:$28 sps:$4 sm:$0xff]  }
 0x3b5   : > { %v2801_v1 = vadd.f32 %v2800_v0, %v2591_v61  ;;  %v2802_v2 = vpop.f32.mrb[6].mxu1  ;;  %v5746_v61 = vld [vmem:[%s7761_s8 + $0x10] ss:$28 sps:$4 sm:$0xff]  }
 0x3b6   : > { %v2846_v3 = vmax.f32 %v2799_v63, 0.0  ;;  %v2803_v4 = vpop.f32.mrb[7].mxu1  ;;  %v5750_v63 = vld [vmem:[%s7761_s8 + $0x18] ss:$28 sps:$4 sm:$0xff]   ;;  %v5753_v0 = vld [vmem:[%s7761_s8 + $0x4c] ss:$28 sps:$4 sm:$0xff]  }
 0x3b7   : > { %v2847_v5 = vmax.f32 %v2801_v1, 0.0  ;;  %v5754_v1 = vld [vmem:[%s7761_s8 + $0x210] ss:$28 sps:$4 sm:$0xff]   ;;  %v5751_v2 = vld [vmem:[%s7761_s8 + $0x48] ss:$28 sps:$4 sm:$0xff]  }
 0x3b8   : > { %v7285_v9 = vpack.c.bf16 %v2846_v3, %v2846_v3  ;;  %v5755_v3 = vld [vmem:[%s7761_s8 + $0x50] ss:$28 sps:$4 sm:$0xff]   ;;  %v5758_v4 = vld [vmem:[%s7761_s8 + $0x84] ss:$28 sps:$4 sm:$0xff]  }
 0x3b9   : > { %v7277_v6 = vpack.c.bf16 %v2847_v5, %v2847_v5  ;;  %v5759_v5 = vld [vmem:[%s7761_s8 + $0x248] ss:$28 sps:$4 sm:$0xff]  }
 0x3bb   : > { %4026 = vmatprep.mubr.bf16.mxu1 %v7277_v6  ;;  %4108 = vmatprep.mubr.bf16.mxu0 %v7277_v6 }
 0x3bc   : > { %4027 = vmatmul.mubr.bf16.vlgmr.msra.gmra.mrb[12].mxu1 %v7285_v9  ;;  %4109 = vmatmul.mubr.bf16.vlgmr.msra.gmra.mrb[8].mxu0 %v7285_v9 }
 0x3bd   : > { %4036 = vmatpush1.bf16.msra.mxu1 %v5692_v7  ;;  %4118 = vmatpush1.bf16.msra.mxu0 %v5695_v8  ;;  %v5756_v7 = vld [vmem:[%s7761_s8 + $0x80] ss:$28 sps:$4 sm:$0xff]  }
 0x3be   : > { %4037 = vmatprep.subr.bf16.mxu1 %v5700_v10  ;;  %4119 = vmatprep.subr.bf16.mxu0 %v5703_v12  ;;  %v5763_v8 = vld [vmem:[%s7761_s8 + $0xbc] ss:$28 sps:$4 sm:$0xff]  }
 0x3bf   : > { %v5764_v10 = vld [vmem:[%s7761_s8 + $0x280] ss:$28 sps:$4 sm:$0xff]   ;;  %v5761_v12 = vld [vmem:[%s7761_s8 + $0xb8] ss:$28 sps:$4 sm:$0xff]  }
 0x3c1   : > { %4038 = vmatpush1.bf16.msra.mxu1 %v5698_v13  ;;  %4120 = vmatpush1.bf16.msra.mxu0 %v5701_v14  ;;  %v5765_v13 = vld [vmem:[%s7761_s8 + $0xc0] ss:$28 sps:$4 sm:$0xff]   ;;  %v5768_v14 = vld [vmem:[%s7761_s8 + $0xf4] ss:$28 sps:$4 sm:$0xff]  }
 0x3c2   : > { %4039 = vmatprep.subr.bf16.mxu1 %v5706_v15  ;;  %4121 = vmatprep.subr.bf16.mxu0 %v5709_v16  ;;  %v5769_v15 = vld [vmem:[%s7761_s8 + $0x2b8] ss:$28 sps:$4 sm:$0xff]   ;;  %v5766_v16 = vld [vmem:[%s7761_s8 + $0xf0] ss:$28 sps:$4 sm:$0xff]  }
 0x3c5   : > { %4040 = vmatpush1.bf16.msra.mxu1 %v5704_v11  ;;  %4122 = vmatpush1.bf16.msra.mxu0 %v5707_v19  ;;  %v5770_v11 = vld [vmem:[%s7761_s8 + $0xf8] ss:$28 sps:$4 sm:$0xff]   ;;  %v5773_v19 = vld [vmem:[%s7761_s8 + $0x12c] ss:$28 sps:$4 sm:$0xff]  }
 0x3c6   : > { %4041 = vmatprep.subr.bf16.mxu1 %v5712_v23  ;;  %4123 = vmatprep.subr.bf16.mxu0 %v5715_v24  ;;  %v5774_v23 = vld [vmem:[%s7761_s8 + $0x2f0] ss:$28 sps:$4 sm:$0xff]   ;;  %v5771_v24 = vld [vmem:[%s7761_s8 + $0x128] ss:$28 sps:$4 sm:$0xff]  }
 0x3c9   : > { %4042 = vmatpush1.bf16.msra.mxu1 %v5710_v25  ;;  %4124 = vmatpush1.bf16.msra.mxu0 %v5713_v26  ;;  %v5775_v25 = vld [vmem:[%s7761_s8 + $0x130] ss:$28 sps:$4 sm:$0xff]   ;;  %v5778_v26 = vld [vmem:[%s7761_s8 + $0x164] ss:$28 sps:$4 sm:$0xff]  }
 0x3ca   : > { %4043 = vmatprep.subr.bf16.mxu1 %v5718_v27  ;;  %4125 = vmatprep.subr.bf16.mxu0 %v5721_v28  ;;  %v5779_v27 = vld [vmem:[%s7761_s8 + $0x328] ss:$28 sps:$4 sm:$0xff]   ;;  %v5776_v28 = vld [vmem:[%s7761_s8 + $0x160] ss:$28 sps:$4 sm:$0xff]  }
 0x3cd   : > { %4044 = vmatpush1.bf16.msra.mxu1 %v5716_v29  ;;  %4126 = vmatpush1.bf16.msra.mxu0 %v5719_v30  ;;  %v5780_v29 = vld [vmem:[%s7761_s8 + $0x168] ss:$28 sps:$4 sm:$0xff]   ;;  %v5783_v30 = vld [vmem:[%s7761_s8 + $0x19c] ss:$28 sps:$4 sm:$0xff]  }
 0x3ce   : > { %4045 = vmatprep.subr.bf16.mxu1 %v5724_v31  ;;  %4127 = vmatprep.subr.bf16.mxu0 %v5727_v32  ;;  %v5784_v31 = vld [vmem:[%s7761_s8 + $0x360] ss:$28 sps:$4 sm:$0xff]   ;;  %v5781_v32 = vld [vmem:[%s7761_s8 + $0x198] ss:$28 sps:$4 sm:$0xff]  }
 0x3d1   : > { %4046 = vmatpush1.bf16.msra.mxu1 %v5722_v33  ;;  %4128 = vmatpush1.bf16.msra.mxu0 %v5725_v34  ;;  %v5785_v33 = vld [vmem:[%s7761_s8 + $0x1a0] ss:$28 sps:$4 sm:$0xff]   ;;  %v5788_v34 = vld [vmem:[%s7761_s8 + $0x1d4] ss:$28 sps:$4 sm:$0xff]  }
 0x3d2   : > { %4047 = vmatprep.subr.bf16.mxu1 %v5730_v35  ;;  %4129 = vmatprep.subr.bf16.mxu0 %v5733_v36  ;;  %v5786_v35 = vld [vmem:[%s7761_s8 + $0x1d0] ss:$28 sps:$4 sm:$0xff]   ;;  %v5789_v36 = vld [vmem:[%s7761_s8 + $0x398] ss:$28 sps:$4 sm:$0xff]  }
 0x3d3   : > { %v2839_v43 = vpop.f32.mrb[8].mxu1 }
 0x3d4   : > { %v2841_v44 = vpop.f32.mrb[9].mxu1  ;;  %v2840_v49 = vadd.f32 %v2839_v43, %v2595_v40  ;;  %v5796_v40 = vld [vmem:[%s7761_s8 + $0x244] ss:$28 sps:$4 sm:$0xff]   ;;  %v5800_v43 = vld [vmem:[%s7761_s8 + $0x27c] ss:$28 sps:$4 sm:$0xff]  }
 0x3d5   : > { %v2842_v45 = vadd.f32 %v2841_v44, %v2599_v37  ;;  %v2843_v46 = vpop.f32.mrb[10].mxu1  ;;  %4048 = vmatpush1.bf16.msra.mxu1 %v5728_v38  ;;  %4130 = vmatpush1.bf16.msra.mxu0 %v5731_v39  ;;  %v5792_v37 = vld [vmem:[%s7761_s8 + $0x20c] ss:$28 sps:$4 sm:$0xff]   ;;  %v5798_v44 = vld [vmem:[%s7761_s8 + $0x278] ss:$28 sps:$4 sm:$0xff]  }
 0x3d6   : > { %v2844_v50 = vpop.f32.mrb[11].mxu1  ;;  %4049 = vmatprep.subr.bf16.mxu1 %v5736_v41  ;;  %4131 = vmatprep.subr.bf16.mxu0 %v5739_v42  ;;  %v2848_v58 = vmax.f32 %v2840_v49, 0.0  ;;  %v5790_v38 = vld [vmem:[%s7761_s8 + $0x208] ss:$28 sps:$4 sm:$0xff]   ;;  %v5793_v39 = vld [vmem:[%s7761_s8 + $0x3d0] ss:$28 sps:$4 sm:$0xff]  }
 0x3d7   : > { %v2849_v53 = vmax.f32 %v2842_v45, 0.0  ;;  %v5794_v41 = vld [vmem:[%s7761_s8 + $0x240] ss:$28 sps:$4 sm:$0xff]   ;;  %v5797_v42 = vld [vmem:[%s7761_s8 + $0x408] ss:$28 sps:$4 sm:$0xff]  }
 0x3d8   : > { %v7406_v62 = vpack.c.bf16 %v2848_v58, %v2848_v58  ;;  %v5801_v45 = vld [vmem:[%s7761_s8 + $0x440] ss:$28 sps:$4 sm:$0xff]   ;;  %v5804_v46 = vld [vmem:[%s7761_s8 + $0x2b4] ss:$28 sps:$4 sm:$0xff]   ;;  %v5808_v49 = vld [vmem:[%s7761_s8 + $0x2ec] ss:$28 sps:$4 sm:$0xff]  }
 0x3d9   : > { %v7385_v55 = vpack.c.bf16 %v2849_v53, %v2849_v53  ;;  %4050 = vmatpush1.bf16.msra.mxu1 %v5734_v47  ;;  %4132 = vmatpush1.bf16.msra.mxu0 %v5737_v48  ;;  %v5802_v47 = vld [vmem:[%s7761_s8 + $0x2b0] ss:$28 sps:$4 sm:$0xff]   ;;  %v5805_v48 = vld [vmem:[%s7761_s8 + $0x478] ss:$28 sps:$4 sm:$0xff]   ;;  %v5806_v50 = vld [vmem:[%s7761_s8 + $0x2e8] ss:$28 sps:$4 sm:$0xff]  }
 0x3da   : > { %4051 = vmatprep.subr.bf16.mxu1 %v5742_v51  ;;  %4133 = vmatprep.subr.bf16.mxu0 %v5745_v52  ;;  %v5809_v51 = vld [vmem:[%s7761_s8 + $0x4b0] ss:$28 sps:$4 sm:$0xff]   ;;  %v5812_v52 = vld [vmem:[%s7761_s8 + $0x324] ss:$28 sps:$4 sm:$0xff]   ;;  %v5814_v58 = vld [vmem:[%s7761_s8 + $0x358] ss:$28 sps:$4 sm:$0xff]  }
 0x3db   : > { %4997 = vmatprep.mubr.msk.bf16.mxu1 %vm2457_vm0, %v7385_v55  ;;  %4998 = vmatprep.mubr.msk.bf16.mxu0 %vm2457_vm0, %v7385_v55  ;;  %v5810_v53 = vld [vmem:[%s7761_s8 + $0x320] ss:$28 sps:$4 sm:$0xff]  }
 0x3dd   : > { %4052 = vmatpush1.bf16.msra.mxu1 %v5740_v56  ;;  %4134 = vmatpush1.bf16.msra.mxu0 %v5743_v57  ;;  %v5813_v56 = vld [vmem:[%s7761_s8 + $0x4e8] ss:$28 sps:$4 sm:$0xff]   ;;  %v5816_v57 = vld [vmem:[%s7761_s8 + $0x35c] ss:$28 sps:$4 sm:$0xff]  }
 0x3de   : > { %4158 = vmatprep.subr.bf16.mxu1 %v5748_v59  ;;  %5008 = vmatprep.subr.bf16.mxu0 %v5749_v60  ;;  %v5817_v59 = vld [vmem:[%s7761_s8 + $0x520] ss:$28 sps:$4 sm:$0xff]   ;;  %v5820_v60 = vld [vmem:[%s7761_s8 + $0x394] ss:$28 sps:$4 sm:$0xff]  }
 0x3e0   : > { %4068 = vmatmul.mubr.bf16.vlgmr.msra.gmra.mrb[12].mxu1 %v7406_v62  ;;  %4150 = vmatmul.mubr.bf16.vlgmr.msra.gmra.mrb[8].mxu0 %v7406_v62 }
 0x3e1   : > { %4159 = vmatpush1.bf16.msra.mxu1 %v5746_v61  ;;  %4190 = vmatprep.mubr.bf16.mxu1 %v7277_v6  ;;  %v5818_v61 = vld [vmem:[%s7761_s8 + $0x390] ss:$28 sps:$4 sm:$0xff]  }
 0x3e2   : > { %5009 = vmatpush3.bf16.msra.mxu0 %v5750_v63  ;;  %4272 = vmatprep.mubr.bf16.mxu0 %v7277_v6  ;;  %v5760_v6 = vld [vmem:[%s7761_s8 + $0x88] ss:$28 sps:$4 sm:$0xff]   ;;  %v5821_v63 = vld [vmem:[%s7761_s8 + $0x558] ss:$28 sps:$4 sm:$0xff]  }
 0x3e3   : > { %4160 = vmatprep.subr.bf16.mxu1 %v5753_v0  ;;  %5010 = vmatprep.subr.bf16.mxu0 %v5754_v1  ;;  %v5824_v0 = vld [vmem:[%s7761_s8 + $0x3cc] ss:$28 sps:$4 sm:$0xff]  }
 0x3e4   : > { %v5822_v1 = vld [vmem:[%s7761_s8 + $0x3c8] ss:$28 sps:$4 sm:$0xff]  }
 0x3e5   : > { %4161 = vmatpush1.bf16.msra.mxu1 %v5751_v2  ;;  %v5827_v2 = vld [vmem:[%s7761_s8 + $0x404] ss:$28 sps:$4 sm:$0xff]  }
 0x3e6   : > { %5011 = vmatpush3.bf16.msra.mxu0 %v5755_v3  ;;  %4162 = vmatprep.subr.bf16.mxu1 %v5758_v4  ;;  %v5833_v3 = vld [vmem:[%s7761_s8 + $0x474] ss:$28 sps:$4 sm:$0xff]  }
 0x3e7   : > { %5012 = vmatprep.subr.bf16.mxu0 %v5759_v5  ;;  %v5831_v4 = vld [vmem:[%s7761_s8 + $0x470] ss:$28 sps:$4 sm:$0xff]  }
 0x3e8   : > { %v5836_v5 = vld [vmem:[%s7761_s8 + $0x4ac] ss:$28 sps:$4 sm:$0xff]  }
 0x3e9   : > { %4163 = vmatpush1.bf16.msra.mxu1 %v5756_v7  ;;  %v5834_v7 = vld [vmem:[%s7761_s8 + $0x4a8] ss:$28 sps:$4 sm:$0xff]  }
 0x3ea   : > { %5013 = vmatpush3.bf16.msra.mxu0 %v5760_v6  ;;  %4164 = vmatprep.subr.bf16.mxu1 %v5763_v8  ;;  %v5839_v6 = vld [vmem:[%s7761_s8 + $0x4e4] ss:$28 sps:$4 sm:$0xff]  }
 0x3eb   : > { %5014 = vmatprep.subr.bf16.mxu0 %v5764_v10  ;;  %v5837_v8 = vld [vmem:[%s7761_s8 + $0x4e0] ss:$28 sps:$4 sm:$0xff]  }
 0x3ec   : > { %v5842_v10 = vld [vmem:[%s7761_s8 + $0x51c] ss:$28 sps:$4 sm:$0xff]  }
 0x3ed   : > { %4165 = vmatpush1.bf16.msra.mxu1 %v5761_v12  ;;  %v5840_v12 = vld [vmem:[%s7761_s8 + $0x518] ss:$28 sps:$4 sm:$0xff]  }
 0x3ee   : > { %5015 = vmatpush3.bf16.msra.mxu0 %v5765_v13  ;;  %4166 = vmatprep.subr.bf16.mxu1 %v5768_v14  ;;  %v5845_v13 = vld [vmem:[%s7761_s8 + $0x554] ss:$28 sps:$4 sm:$0xff]  }
 0x3ef   : > { %5016 = vmatprep.subr.bf16.mxu0 %v5769_v15  ;;  %v5843_v14 = vld [vmem:[%s7761_s8 + $0x550] ss:$28 sps:$4 sm:$0xff]   ;;  %v7648_v15 = vld [vmem:[%s7762_s9] sm:$0xff] }
 0x3f1   : > { %4167 = vmatpush1.bf16.msra.mxu1 %v5766_v16  ;;  %v3059_v16 = vrot.slane %v7648_v15, %v6898_v18 }
 0x3f2   : > { %5017 = vmatpush3.bf16.msra.mxu0 %v5770_v11  ;;  %4168 = vmatprep.subr.bf16.mxu1 %v5773_v19  ;;  %v3067_v11 = vrot.slane %v7648_v15, %v6947_v54  ;;  %v3063_v19 = vrot.slane %v7648_v15, %v6904_v20 }
 0x3f3   : > { %5018 = vmatprep.subr.bf16.mxu0 %v5774_v23  ;;  %v3071_v23 = vrot.slane %v7648_v15, %v6907_v22 }
 0x3f5   : > { %4169 = vmatpush1.bf16.msra.mxu1 %v5771_v24 }
 0x3f6   : > { %5019 = vmatpush3.bf16.msra.mxu0 %v5775_v25  ;;  %4170 = vmatprep.subr.bf16.mxu1 %v5778_v26 }
 0x3f7   : > { %5020 = vmatprep.subr.bf16.mxu0 %v5779_v27 }
 0x3f9   : > { %4171 = vmatpush1.bf16.msra.mxu1 %v5776_v28 }
 0x3fa   : > { %5021 = vmatpush3.bf16.msra.mxu0 %v5780_v29  ;;  %4172 = vmatprep.subr.bf16.mxu1 %v5783_v30 }
 0x3fb   : > { %5022 = vmatprep.subr.bf16.mxu0 %v5784_v31 }
 0x3fd   : > { %4173 = vmatpush1.bf16.msra.mxu1 %v5781_v32 }
 0x3fe   : > { %5023 = vmatpush3.bf16.msra.mxu0 %v5785_v33  ;;  %4174 = vmatprep.subr.bf16.mxu1 %v5788_v34 }
 0x3ff   : > { %4280 = vmatprep.subr.bf16.mxu0 %v5972_v21 }
 0x401   : > { %4273 = vmatmul.mubr.bf16.vlgmr.msra.gmra.mrb[12].mxu0 %v7285_v9  ;;  %4175 = vmatpush1.bf16.msra.mxu1 %v5786_v35 }
 0x402   : > { %4281 = vmatpush1.bf16.msra.mxu0 %v5789_v36  ;;  %5000 = vmatprep.mubr.msk.bf16.mxu0 %vm2457_vm0, %v7385_v55 }
 0x403   : > { %4176 = vmatprep.subr.bf16.mxu1 %v5792_v37  ;;  %4282 = vmatprep.subr.bf16.mxu0 %v5972_v21 }
 0x405   : > { %4177 = vmatpush1.bf16.msra.mxu1 %v5790_v38 }
 0x406   : > { %4283 = vmatpush1.bf16.msra.mxu0 %v5793_v39  ;;  %4178 = vmatprep.subr.bf16.mxu1 %v5796_v40 }
 0x407   : > { %4284 = vmatprep.subr.bf16.mxu0 %v5972_v21 }
 0x409   : > { %4179 = vmatpush1.bf16.msra.mxu1 %v5794_v41 }
 0x40a   : > { %4285 = vmatpush1.bf16.msra.mxu0 %v5797_v42  ;;  %4180 = vmatprep.subr.bf16.mxu1 %v5800_v43 }
 0x40b   : > { %4286 = vmatprep.subr.bf16.mxu0 %v5972_v21 }
 0x40d   : > { %4181 = vmatpush1.bf16.msra.mxu1 %v5798_v44 }
 0x40e   : > { %4287 = vmatpush1.bf16.msra.mxu0 %v5801_v45  ;;  %4182 = vmatprep.subr.bf16.mxu1 %v5804_v46 }
 0x40f   : > { %4288 = vmatprep.subr.bf16.mxu0 %v5972_v21 }
 0x411   : > { %4183 = vmatpush1.bf16.msra.mxu1 %v5802_v47 }
 0x412   : > { %4289 = vmatpush1.bf16.msra.mxu0 %v5805_v48  ;;  %4184 = vmatprep.subr.bf16.mxu1 %v5808_v49 }
 0x413   : > { %4290 = vmatprep.subr.bf16.mxu0 %v5972_v21 }
 0x415   : > { %4185 = vmatpush1.bf16.msra.mxu1 %v5806_v50 }
 0x416   : > { %4291 = vmatpush1.bf16.msra.mxu0 %v5809_v51  ;;  %4186 = vmatprep.subr.bf16.mxu1 %v5812_v52 }
 0x417   : > { %4292 = vmatprep.subr.bf16.mxu0 %v5972_v21 }
 0x419   : > { %4187 = vmatpush1.bf16.msra.mxu1 %v5810_v53 }
 0x41a   : > { %4293 = vmatpush1.bf16.msra.mxu0 %v5813_v56  ;;  %4188 = vmatprep.subr.bf16.mxu1 %v5816_v57 }
 0x41b   : > { %4294 = vmatprep.subr.bf16.mxu0 %v5972_v21 }
 0x41d   : > { %4189 = vmatpush1.bf16.msra.mxu1 %v5814_v58 }
 0x41e   : > { %4295 = vmatpush1.bf16.msra.mxu0 %v5817_v59  ;;  %4199 = vmatprep.subr.bf16.mxu1 %v5820_v60 }
 0x41f   : > { %4296 = vmatprep.subr.bf16.mxu0 %v5972_v21  ;;  %v5825_v21 = vld [vmem:[%s7761_s8 + $0x400] ss:$28 sps:$4 sm:$0xff]  }
 0x420   : > { %4191 = vmatmul.mubr.bf16.vlgmr.msra.gmra.mrb[16].mxu1 %v7285_v9  ;;  %v5830_v9 = vld [vmem:[%s7761_s8 + $0x43c] ss:$28 sps:$4 sm:$0xff]  }
 0x421   : > { %4200 = vmatpush1.bf16.msra.mxu1 %v5818_v61  ;;  %4999 = vmatprep.mubr.msk.bf16.mxu1 %vm2457_vm0, %v7385_v55  ;;  %v5828_v55 = vld [vmem:[%s7761_s8 + $0x438] ss:$28 sps:$4 sm:$0xff]  }
 0x422   : > { %4297 = vmatpush1.bf16.msra.mxu0 %v5821_v63  ;;  %4201 = vmatprep.subr.bf16.mxu1 %v5824_v0 }
 0x425   : > { %4313 = vmatmul.mubr.bf16.vlgmr.msra.gmra.mrb[16].mxu0 %v7406_v62  ;;  %4202 = vmatpush1.bf16.msra.mxu1 %v5822_v1 }
 0x426   : > { %4203 = vmatprep.subr.bf16.mxu1 %v5827_v2 }
 0x429   : > { %4204 = vmatpush1.bf16.msra.mxu1 %v5825_v21 }
 0x42a   : > { %4205 = vmatprep.subr.bf16.mxu1 %v5830_v9 }
 0x42d   : > { %4206 = vmatpush1.bf16.msra.mxu1 %v5828_v55 }
 0x42e   : > { %4207 = vmatprep.subr.bf16.mxu1 %v5833_v3 }
 0x431   : > { %4208 = vmatpush1.bf16.msra.mxu1 %v5831_v4 }
 0x432   : > { %4209 = vmatprep.subr.bf16.mxu1 %v5836_v5 }
 0x435   : > { %4210 = vmatpush1.bf16.msra.mxu1 %v5834_v7 }
 0x436   : > { %4211 = vmatprep.subr.bf16.mxu1 %v5839_v6 }
 0x439   : > { %4212 = vmatpush1.bf16.msra.mxu1 %v5837_v8 }
 0x43a   : > { %4213 = vmatprep.subr.bf16.mxu1 %v5842_v10 }
 0x43d   : > { %4214 = vmatpush1.bf16.msra.mxu1 %v5840_v12 }
 0x43e   : > { %4215 = vmatprep.subr.bf16.mxu1 %v5845_v13 }
 0x441   : > { %4216 = vmatpush1.bf16.msra.mxu1 %v5843_v14 }
 0x444   : > { %4232 = vmatmul.mubr.bf16.vlgmr.msra.gmra.mrb[16].mxu1 %v7406_v62 }
 0x4b3   : > { %v4069_v24 = vpop.f32.mrb[12].mxu1  ;;  %v4151_v25 = vpop.f32.mrb[8].mxu0 }
 0x4b4   : > { %v5036_v62 = vadd.f32 %v4069_v24, %v3059_v16  ;;  %v5038_v26 = vadd.f32 %v4151_v25, %v3067_v11  ;;  %v4071_v27 = vpop.f32.mrb[13].mxu1  ;;  %v4153_v28 = vpop.f32.mrb[9].mxu0 }
 0x4b5   : > { %v5037_v29 = vadd.f32 %v4071_v27, %v3063_v19  ;;  %v5039_v30 = vadd.f32 %v4153_v28, %v3071_v23  ;;  %v4073_v18 = vpop.f32.mrb[14].mxu1  ;;  %v4155_v31 = vpop.f32.mrb[10].mxu0 }
 0x4b6   : > { %v4320_v32 = vsub.f32 0.0, %v5036_v62  ;;  %v4322_v54 = vsub.f32 0.0, %v5038_v26  ;;  %v4074_v33 = vpop.f32.mrb[15].mxu1  ;;  %v4156_v20 = vpop.f32.mrb[11].mxu0 }
 0x4b7   : > { %v4321_v34 = vsub.f32 0.0, %v5037_v29  ;;  %v4323_v22 = vsub.f32 0.0, %v5039_v30 }
 0x4b8   : > { %v4327_v35 = vmul.f32 1.442695, %v4320_v32  ;;  %v4331_v36 = vmul.f32 1.442695, %v4322_v54 }
 0x4b9   : > { %v4329_v37 = vmul.f32 1.442695, %v4321_v34  ;;  %v4333_v38 = vmul.f32 1.442695, %v4323_v22 }
 0x4ba   : > { %5848 = vpow2.f32 %v4327_v35 }
 0x4bb   : > { %5850 = vpow2.f32 %v4331_v36 }
 0x4bc   : > { %5852 = vpow2.f32 %v4329_v37 }
 0x4bd   : > { %5889 = shalt.err (!%p5886_p3)
}
 0x4be   : > { %s5890_s26 = scalar_lea.hbm %s7662_s0, 256  ;;  %s5894_s12 = scalar_lea.hbm %s7764_s11, 512 }
 0x4bf   : > { %p5891_p4 = scmp.ne.s32.totalorder %s7662_s0, %s5890_s26  ;;  %p5895_p9 = scmp.lt.u32.totalorder %s7662_s0, %s7764_s11 }
 0x4c0   : > { %p5896_p10 = scmp.lt.u32.totalorder %s5894_s12, %s5890_s26  ;;  %p5898_p12 = scmp.lt.u32.totalorder %s5890_s26, %s7662_s0 }
 0x4c1   : > { %p5892_p7 = pnand %p5891_p4, %p6073_p5 }
 0x4c2   : > { %p5897_p11 = por %p5896_p10, %p5895_p9 }
 0x4c3   : > { %p5893_p8 = pneg %p5892_p7 }
 0x4c4   : > { %p5899_p13 = por %p5898_p12, %p5897_p11 }
 0x4c6   : > { %p5900_p0 = pnand %p5899_p13, %p5893_p8 }
 0x4c8   : > { %5903 = shalt.err (!%p5900_p0)
}
 0x4c9   : > { %5086 = dma.vmem_to_hbm [thread:$0]  (%p6073_p5), %s7665_s13, 256, %s7662_s0, %s4370_s14   ;;  %5854 = vpow2.f32 %v4333_v38  ;;  %v5849_v39 = vpop.eup %5848  ;;  %v3082_v58 = vsub.s32 6, %v6895_v17  ;;  %v3074_v4 = vsub.s32 4, %v6895_v17  ;;  %v3078_v5 = vsub.s32 5, %v6895_v17 }
 0x4ca   : > { %v5851_v40 = vpop.eup %5850  ;;  %v4341_v41 = vadd.f32 1.0, %v5849_v39  ;;  %s5082_s15 = smul.u32 56, %s7092_s23  ;;  %s4365_s26 = scalar_lea.sflag [#allocation3], %s7092_s23 }
 0x4cb   : > { %v5853_v42 = vpop.eup %5852  ;;  %v4343_v43 = vadd.f32 1.0, %v5851_v40  ;;  %v3083_v59 = vrot.slane %v7648_v15, %v3082_v58  ;;  %v3075_v7 = vrot.slane %v7648_v15, %v3074_v4  ;;  %v3079_v6 = vrot.slane %v7648_v15, %v3078_v5  ;;  %s5084_s0 = smul.u32 896, %s6056_s21  ;;  %s5974_s21 = smov [#allocation2]  }
 0x4cc   : > { %5856 = vrcp.f32 %v4341_v41  ;;  %v4342_v45 = vadd.f32 1.0, %v5853_v42  ;;  %s7690_s19 = scalar_lea.vmem [#allocation2], %s5082_s15  ;;  %s5908_s24 = sshll.u32 %s5974_s21, 4  ;;  %s5909_s24 = int_to_ptr.vmem [resolvable:$false] %s5908_s24 }
 0x4cd   : > { %5858 = vrcp.f32 %v4343_v43  ;;  %s4384_s13 = sshll.u32 %s7690_s19, 4  ;;  %s7708_s25 = scalar_lea.hbm %s7763_s10, %s5084_s0  ;;  %s7710_s13 = int_to_ptr.vmem [resolvable:$true] %s4384_s13 }
 0x4ce   : > { %5860 = vrcp.f32 %v4342_v45  ;;  %s5904_s22 = scalar_lea.vmem %s7710_s13, 896  ;;  %s5910_s12 = scalar_lea.vmem %s5909_s24, 1792 }
 0x4cf   : > { %p5905_p1 = scmp.ne.s32.totalorder %s7710_s13, %s5904_s22  ;;  %p5911_p4 = scmp.lt.s32.totalorder %s7710_s13, %s5909_s24 }
 0x4d0   : > { %p5912_p7 = scmp.lt.s32.totalorder %s5910_s12, %s5904_s22 }
 0x4d1   : > { %p5906_p2 = pnand %p5905_p1, %p6073_p5 }
 0x4d2   : > { %p5913_p8 = por %p5912_p7, %p5911_p4 }
 0x4d3   : > { %v5855_v44 = vpop.eup %5854  ;;  %p5907_p3 = pneg %p5906_p2 }
 0x4d4   : > { %v4344_v46 = vadd.f32 1.0, %v5855_v44  ;;  %v5024_v51 = vpop.f32.mrb[12].mxu0 }
 0x4d5   : > { %v5025_v52 = vpop.f32.mrb[13].mxu0  ;;  %p5914_p9 = pnand %p5913_p8, %p5907_p3 }
 0x4d6   : > { %5862 = vrcp.f32 %v4344_v46  ;;  %v5857_v47 = vpop.eup %5856  ;;  %v5026_v53 = vadd.f32 %v5025_v52, %v5024_v51  ;;  %v5027_v56 = vpop.f32.mrb[14].mxu0 }
 0x4d7   : > { %v5859_v48 = vpop.eup %5858  ;;  %4355 = vst [vmem:[%s7690_s19] sm:$0xff] %v5857_v47  ;;  %v5028_v57 = vpop.f32.mrb[15].mxu0 }
 0x4d8   : > { %v5861_v49 = vpop.eup %5860  ;;  %4357 = vst [vmem:[%s7690_s19 + $0x10] sm:$0xff] %v5859_v48  ;;  %v4275_v60 = vadd.f32 %v5026_v53, %v3083_v59 }
 0x4d9   : > { %4356 = vst [vmem:[%s7690_s19 + $0x8] sm:$0xff] %v5861_v49 }
 0x4e0   : > { %v5863_v50 = vpop.eup %5862 }
 0x4e1   : > { %4358 = vst [vmem:[%s7690_s19 + $0x18] sm:$0xff] %v5863_v50 }
 0x4f8   : > { %v4314_v61 = vpop.f32.mrb[16].mxu0 }
 0x4f9   : > { %v4315_v63 = vadd.f32 %v4314_v61, %v4275_v60  ;;  %v4316_v0 = vpop.f32.mrb[17].mxu0 }
 0x4fa   : > { %v4317_v1 = vpop.f32.mrb[18].mxu0 }
 0x4fb   : > { %v4326_v2 = vsub.f32 0.0, %v4315_v63  ;;  %v4318_v21 = vpop.f32.mrb[19].mxu0 }
 0x4fd   : > { %v4339_v9 = vmul.f32 1.442695, %v4326_v2 }
 0x4ff   : > { %5864 = vpow2.f32 %v4339_v9 }
 0x509   : > { %v5865_v55 = vpop.eup %5864 }
 0x50a   : > { %v4347_v3 = vadd.f32 1.0, %v5865_v55 }
 0x50c   : > { %5866 = vrcp.f32 %v4347_v3 }
 0x516   : > { %v5867_v8 = vpop.eup %5866 }
 0x517   : > { %4361 = vst [vmem:[%s7690_s19 + $0x30] sm:$0xff] %v5867_v8  ;;  %v4233_v10 = vpop.f32.mrb[16].mxu1 }
 0x518   : > { %v5040_v12 = vadd.f32 %v4233_v10, %v3075_v7  ;;  %v4235_v13 = vpop.f32.mrb[17].mxu1 }
 0x519   : > { %v5041_v14 = vadd.f32 %v4235_v13, %v3079_v6  ;;  %v4237_v16 = vpop.f32.mrb[18].mxu1 }
 0x51a   : > { %v4324_v11 = vsub.f32 0.0, %v5040_v12  ;;  %v4238_v19 = vpop.f32.mrb[19].mxu1 }
 0x51b   : > { %v4325_v23 = vsub.f32 0.0, %v5041_v14 }
 0x51c   : > { %v4335_v24 = vmul.f32 1.442695, %v4324_v11 }
 0x51d   : > { %v4337_v25 = vmul.f32 1.442695, %v4325_v23 }
 0x51e   : > { %5868 = vpow2.f32 %v4335_v24 }
 0x51f   : > { %5870 = vpow2.f32 %v4337_v25 }
 0x528   : > { %v5869_v17 = vpop.eup %5868 }
 0x529   : > { %v5871_v15 = vpop.eup %5870  ;;  %v4345_v62 = vadd.f32 1.0, %v5869_v17 }
 0x52a   : > { %v4346_v26 = vadd.f32 1.0, %v5871_v15 }
 0x52b   : > { %5872 = vrcp.f32 %v4345_v62 }
 0x52c   : > { %5874 = vrcp.f32 %v4346_v26 }
 0x535   : > { %v5873_v27 = vpop.eup %5872 }
 0x536   : > { %v5875_v28 = vpop.eup %5874  ;;  %4359 = vst [vmem:[%s7690_s19 + $0x20] sm:$0xff] %v5873_v27 }
 0x537   : > { %4360 = vst [vmem:[%s7690_s19 + $0x28] sm:$0xff] %v5875_v28 }
 0x538   : > { %5917 = shalt.err (!%p5914_p9)
}
 0x539   : > { %s5918_s23 = scalar_lea.hbm %s7708_s25, 896  ;;  %s5922_s15 = scalar_lea.hbm %s7763_s10, 1792 }
 0x53a   : > { %p5919_p10 = scmp.ne.s32.totalorder %s7708_s25, %s5918_s23  ;;  %p5923_p13 = scmp.lt.u32.totalorder %s7708_s25, %s7763_s10 }
 0x53b   : > { %p5924_p0 = scmp.lt.u32.totalorder %s5922_s15, %s5918_s23  ;;  %p5926_p2 = scmp.lt.u32.totalorder %s5918_s23, %s7708_s25 }
 0x53c   : > { %p5920_p11 = pnand %p5919_p10, %p6073_p5 }
 0x53d   : > { %p5925_p1 = por %p5924_p0, %p5923_p13 }
 0x53e   : > { %p5921_p12 = pneg %p5920_p11 }
 0x53f   : > { %p5927_p3 = por %p5926_p2, %p5925_p1 }
 0x541   : > { %p5928_p4 = pnand %p5927_p3, %p5921_p12 }
 0x543   : > { %5931 = shalt.err (!%p5928_p4)
}
 0x544   : > { %5085 = dma.vmem_to_hbm [thread:$0]  (%p6073_p5), %s7710_s13, 896, %s7708_s25, %s4365_s26  }
 0x545 PF: > { %p5096_p7 = scmp.ge.s32.totalorder %s5970_s20, 2  ;;  %s4410_s14 = sand.u32 1, %s5958_s17  }
 0x546   : > { %s4411_s16 = scalar_lea.sflag [#allocation3], %s4410_s14 }
 0x547   : > { %p5090_p8 = pnand %p5096_p7, %p6077_p6 }
 0x549   : > { %5949 = dma.done.wait (!%p5090_p8), %s4411_s16, 896  }
 0x54a   : > { %5951 = vsyncadd (!%p5090_p8), %s4411_s16, 4294966400  ;;  %s4420_s22 = scalar_lea.sflag [#allocation5], %s4410_s14 }
 0x54b   : > { %5953 = dma.done.wait (!%p5090_p8), %s4420_s22, 256  }
 0x54c   : > { %5955 = vsyncadd (!%p5090_p8), %s4420_s22, 4294967040  ;;  %s7775_s20 = sld [smem:[#allocation9_spill]]  ;;  %s7776_s27 = sld [smem:[#allocation8_spill]] }
 0x54d   : > { %s7777_s19 = sld [smem:[#allocation10_spill]]  ;;  %s7778_s17 = smov %s5962_s18 }
 0x552   : > { %p25_p5 = scmp.ge.s32.totalorder %s7775_s20, 4   ;;  %s7779_s18 = smov %s7776_s27 }
 0x554   :  { %27 = sbr.rel (!%p25_p5) target bundleno = 7 (0x7), region = 115 }
 0x55b   :  { %4425 = vsyncpa [#allocation3], 1 }
 0x55c   :  { %4427 = vsyncpa [#allocation3 + $0x1], 1 }
 0x55d   :  { %4428 = vsyncpa [#allocation5], 1 }
 0x55e   :  { %4430 = vsyncpa [#allocation5 + $0x1], 1 }

</bundles_post_ra>
